<compile_context>
chip_gen: v7x
topology: tpu7x:2x2x1
jax: 0.10.0
libtpu: 0.0.40
codegen_flags: <defaults>
</compile_context>

<pallas_src>
from functools import partial

import jax
import jax.numpy as jnp
from jax.experimental import pallas as pl
from jax.experimental.pallas import tpu as pltpu


D_IN = 100                          # fc1 input features -- intentionally NOT padded
D1_P, D2_P, D3_P = 256, 512, 256    # hidden widths 200/500/200 padded to 128-multiples
D_OUT_P = 128                       # fc4's single output column padded to one lane group


def _round_up(n, m):
    return ((n + m - 1) // m) * m


def _choose_tiling(batch):
    """Pick (tile_b, padded_batch).

    tile_b is a multiple of 128 and <= 1024: big tiles amortize MXU weight
    pushes and per-grid-step pipeline overhead; batches that need more than
    one tile get >= 2 grid steps so v7x's two TensorCores can split the
    "parallel" batch axis.
    """
    b128 = _round_up(max(batch, 1), 128)
    if b128 <= 128:
        tile = 128                      # tiny batch: one tile
    elif b128 <= 2048:
        tile = _round_up(b128 // 2, 128)  # exactly 2 lane-aligned tiles
    else:
        tile = 1024
    return tile, _round_up(batch, tile)


def _discriminator_kernel(n_out_chunks,
                          x_ref, w1_ref, b1_ref, w2_ref, b2_ref,
                          w3_ref, b3_ref, w4_ref, b4_ref, out_ref):
    # Weights are already (in_features, out_features): y = x @ W + b.
    # K=100 on the first matmul is handled by Mosaic (ragged contraction).
    h = jnp.dot(x_ref[...], w1_ref[...], preferred_element_type=jnp.float32)
    h = jnp.maximum(h + b1_ref[...], 0.0)

    h = jnp.dot(h, w2_ref[...], preferred_element_type=jnp.float32)
    h = jnp.maximum(h + b2_ref[...], 0.0)

    h = jnp.dot(h, w3_ref[...], preferred_element_type=jnp.float32)
    h = jnp.maximum(h + b3_ref[...], 0.0)

    # fc4: only output column 0 is real (w4 is zero-padded 1 -> 128 columns).
    logits = jnp.dot(h, w4_ref[...], preferred_element_type=jnp.float32)
    bias4 = b4_ref[:, 0:1]                                     # (1, 1)

    # Re-layout the logit column into a lane-dense (1, tile_b) row using
    # square (128,128) XLU transposes (small live values, no big relayout),
    # then run sigmoid / stores on tile_b elements instead of tile_b*128.
    for j in range(n_out_chunks):
        blk = jnp.transpose(logits[j * 128:(j + 1) * 128, :])  # (128, 128)
        logit_row = blk[0:1, :] + bias4                        # (1, 128)
        # Exact sigmoid: after the 128x shrink this is negligible work, and
        # exact f32 keeps the 1e-4 tolerance safe (approx recip not needed).
        out_ref[:, j * 128:(j + 1) * 128] = 1.0 / (1.0 + jnp.exp(-logit_row))


def _pad_to(a, shape):
    pads = [(0, s - d) for d, s in zip(a.shape, shape)]
    return jnp.pad(a, pads)


def discriminator_forward(x, params):
    """x: (B, 100) float32; params: dict of (w1,b1,...,w4,b4) in torch layout
    (wN is (out_features, in_features), bN is (1, out_features))."""
    B = x.shape[0]
    tile_b, b_pad = _choose_tiling(B)
    n_tiles = b_pad // tile_b

    x = x.astype(jnp.float32)
    if b_pad != B:                      # row-pad only; feature dim stays 100
        x = jnp.pad(x, ((0, b_pad - B), (0, 0)))

    # Pre-transpose to (in, out) and pad hidden/output dims. Zero rows/cols
    # keep padded activation lanes exactly 0 through the ReLU chain.
    w1 = _pad_to(params["w1"].T, (D_IN, D1_P))
    b1 = _pad_to(params["b1"], (1, D1_P))
    w2 = _pad_to(params["w2"].T, (D1_P, D2_P))
    b2 = _pad_to(params["b2"], (1, D2_P))
    w3 = _pad_to(params["w3"].T, (D2_P, D3_P))
    b3 = _pad_to(params["b3"], (1, D3_P))
    w4 = _pad_to(params["w4"].T, (D3_P, D_OUT_P))
    b4 = _pad_to(params["b4"], (1, D_OUT_P))

    def const_spec(shape):
        # Constant block index -> weights stay VMEM-resident across grid
        # steps (no re-DMA per batch tile).
        return pl.BlockSpec(shape, lambda i: (0, 0))

    out = pl.pallas_call(
        partial(_discriminator_kernel, tile_b // 128),
        out_shape=jax.ShapeDtypeStruct((1, b_pad), jnp.float32),  # lane-dense row
        grid_spec=pltpu.PrefetchScalarGridSpec(
            num_scalar_prefetch=0,
            grid=(n_tiles,),
            in_specs=[
                # Only the activations stream; x keeps its real 100-wide K.
                pl.BlockSpec((tile_b, D_IN), lambda i: (i, 0)),
                const_spec((D_IN, D1_P)), const_spec((1, D1_P)),
                const_spec((D1_P, D2_P)), const_spec((1, D2_P)),
                const_spec((D2_P, D3_P)), const_spec((1, D3_P)),
                const_spec((D3_P, D_OUT_P)), const_spec((1, D_OUT_P)),
            ],
            out_specs=pl.BlockSpec((1, tile_b), lambda i: (0, i)),
        ),
        compiler_params=pltpu.CompilerParams(
            dimension_semantics=("parallel",),  # v7x: batch tiles over 2 TCs
        ),
    )(x, w1, b1, w2, b2, w3, b3, w4, b4)

    # Slice back to the real batch; one real output feature.
    return out[0, :B].reshape(B, 1)


def init_params(key):
    """Deterministic init mimicking nn.Linear's uniform(-1/sqrt(fan_in), 1/sqrt(fan_in)).
    Stored in torch layout: wN = (out_features, in_features)."""
    sizes = [(200, 100), (500, 200), (200, 500), (1, 200)]
    params = {}
    for i, (out_f, in_f) in enumerate(sizes, start=1):
        key, kw, kb = jax.random.split(key, 3)
        bound = 1.0 / jnp.sqrt(in_f)
        params[f"w{i}"] = jax.random.uniform(
            kw, (out_f, in_f), jnp.float32, minval=-bound, maxval=bound)
        params[f"b{i}"] = jax.random.uniform(
            kb, (1, out_f), jnp.float32, minval=-bound, maxval=bound)
    return params


def reference_forward(x, p):
    h = jnp.maximum(x @ p["w1"].T + p["b1"], 0.0)
    h = jnp.maximum(h @ p["w2"].T + p["b2"], 0.0)
    h = jnp.maximum(h @ p["w3"].T + p["b3"], 0.0)
    return jax.nn.sigmoid(h @ p["w4"].T + p["b4"])


if __name__ == "__main__":
    key = jax.random.PRNGKey(0)
    key, kx = jax.random.split(key)
    batch = 8
    x = jax.random.normal(kx, (batch, 100), jnp.float32)
    params = init_params(key)

    out = discriminator_forward(x, params)
    out = jax.block_until_ready(out)

    ref = reference_forward(x, params)
    assert out.shape == (batch, 1), out.shape
    assert jnp.allclose(out, ref, atol=1e-4, rtol=1e-4), \
        float(jnp.max(jnp.abs(out - ref)))
    print("KERNEL_OK")
</pallas_src>

<mosaic_0001>
module attributes {stable_mosaic.version = 11 : i64} {
  func.func @_discriminator_kernel(%arg0: i32, %arg1: memref<128x100xf32, #tpu.memory_space<vmem>>, %arg2: memref<100x256xf32, #tpu.memory_space<vmem>>, %arg3: memref<1x256xf32, #tpu.memory_space<vmem>>, %arg4: memref<256x512xf32, #tpu.memory_space<vmem>>, %arg5: memref<1x512xf32, #tpu.memory_space<vmem>>, %arg6: memref<512x256xf32, #tpu.memory_space<vmem>>, %arg7: memref<1x256xf32, #tpu.memory_space<vmem>>, %arg8: memref<256x128xf32, #tpu.memory_space<vmem>>, %arg9: memref<1x128xf32, #tpu.memory_space<vmem>>, %arg10: memref<1x128xf32, #tpu.memory_space<vmem>>) attributes {dimension_semantics = [#tpu.dimension_semantics<parallel>], iteration_bounds = array<i64: 1>, scalar_prefetch = 0 : i64, scratch_operands = 0 : i64, tpu.core_type = #tpu.core_type<tc>, window_params = [{transform_indices = @transform_0, window_bounds = array<i64: 128, 100>}, {pipeline_mode = #tpu.pipeline_mode<synchronous>, transform_indices = @transform_1, window_bounds = array<i64: 100, 256>}, {pipeline_mode = #tpu.pipeline_mode<synchronous>, transform_indices = @transform_2, window_bounds = array<i64: 1, 256>}, {pipeline_mode = #tpu.pipeline_mode<synchronous>, transform_indices = @transform_3, window_bounds = array<i64: 256, 512>}, {pipeline_mode = #tpu.pipeline_mode<synchronous>, transform_indices = @transform_4, window_bounds = array<i64: 1, 512>}, {pipeline_mode = #tpu.pipeline_mode<synchronous>, transform_indices = @transform_5, window_bounds = array<i64: 512, 256>}, {pipeline_mode = #tpu.pipeline_mode<synchronous>, transform_indices = @transform_6, window_bounds = array<i64: 1, 256>}, {pipeline_mode = #tpu.pipeline_mode<synchronous>, transform_indices = @transform_7, window_bounds = array<i64: 256, 128>}, {pipeline_mode = #tpu.pipeline_mode<synchronous>, transform_indices = @transform_8, window_bounds = array<i64: 1, 128>}, {transform_indices = @transform_9, window_bounds = array<i64: 1, 128>}]} {
    %c0 = arith.constant 0 : index
    %c0_0 = arith.constant 0 : index
    %0 = vector.load %arg1[%c0, %c0_0] : memref<128x100xf32, #tpu.memory_space<vmem>>, vector<128x100xf32>
    %c0_1 = arith.constant 0 : index
    %c0_2 = arith.constant 0 : index
    %1 = vector.load %arg2[%c0_1, %c0_2] : memref<100x256xf32, #tpu.memory_space<vmem>>, vector<100x256xf32>
    %cst = arith.constant dense<0.000000e+00> : vector<128x256xf32>
    %2 = tpu.matmul %0, %1, %cst {dimension_numbers = #tpu.dot_dimension_numbers<[1], [0], [0], [1], [0, 0, 1, 1], [], []>} : vector<128x100xf32>, vector<100x256xf32>, vector<128x256xf32> -> vector<128x256xf32>
    %c0_3 = arith.constant 0 : index
    %c0_4 = arith.constant 0 : index
    %3 = vector.load %arg3[%c0_3, %c0_4] : memref<1x256xf32, #tpu.memory_space<vmem>>, vector<1x256xf32>
    %4 = vector.broadcast %3 : vector<1x256xf32> to vector<128x256xf32>
    %5 = arith.addf %2, %4 : vector<128x256xf32>
    %cst_5 = arith.constant 0.000000e+00 : f32
    %6 = vector.broadcast %cst_5 : f32 to vector<128x256xf32>
    %7 = arith.maximumf %5, %6 : vector<128x256xf32>
    %c0_6 = arith.constant 0 : index
    %c0_7 = arith.constant 0 : index
    %8 = vector.load %arg4[%c0_6, %c0_7] : memref<256x512xf32, #tpu.memory_space<vmem>>, vector<256x512xf32>
    %cst_8 = arith.constant dense<0.000000e+00> : vector<128x512xf32>
    %9 = tpu.matmul %7, %8, %cst_8 {dimension_numbers = #tpu.dot_dimension_numbers<[1], [0], [0], [1], [0, 0, 1, 1], [], []>} : vector<128x256xf32>, vector<256x512xf32>, vector<128x512xf32> -> vector<128x512xf32>
    %c0_9 = arith.constant 0 : index
    %c0_10 = arith.constant 0 : index
    %10 = vector.load %arg5[%c0_9, %c0_10] : memref<1x512xf32, #tpu.memory_space<vmem>>, vector<1x512xf32>
    %11 = vector.broadcast %10 : vector<1x512xf32> to vector<128x512xf32>
    %12 = arith.addf %9, %11 : vector<128x512xf32>
    %cst_11 = arith.constant 0.000000e+00 : f32
    %13 = vector.broadcast %cst_11 : f32 to vector<128x512xf32>
    %14 = arith.maximumf %12, %13 : vector<128x512xf32>
    %c0_12 = arith.constant 0 : index
    %c0_13 = arith.constant 0 : index
    %15 = vector.load %arg6[%c0_12, %c0_13] : memref<512x256xf32, #tpu.memory_space<vmem>>, vector<512x256xf32>
    %cst_14 = arith.constant dense<0.000000e+00> : vector<128x256xf32>
    %16 = tpu.matmul %14, %15, %cst_14 {dimension_numbers = #tpu.dot_dimension_numbers<[1], [0], [0], [1], [0, 0, 1, 1], [], []>} : vector<128x512xf32>, vector<512x256xf32>, vector<128x256xf32> -> vector<128x256xf32>
    %c0_15 = arith.constant 0 : index
    %c0_16 = arith.constant 0 : index
    %17 = vector.load %arg7[%c0_15, %c0_16] : memref<1x256xf32, #tpu.memory_space<vmem>>, vector<1x256xf32>
    %18 = vector.broadcast %17 : vector<1x256xf32> to vector<128x256xf32>
    %19 = arith.addf %16, %18 : vector<128x256xf32>
    %cst_17 = arith.constant 0.000000e+00 : f32
    %20 = vector.broadcast %cst_17 : f32 to vector<128x256xf32>
    %21 = arith.maximumf %19, %20 : vector<128x256xf32>
    %c0_18 = arith.constant 0 : index
    %c0_19 = arith.constant 0 : index
    %22 = vector.load %arg8[%c0_18, %c0_19] : memref<256x128xf32, #tpu.memory_space<vmem>>, vector<256x128xf32>
    %cst_20 = arith.constant dense<0.000000e+00> : vector<128x128xf32>
    %23 = tpu.matmul %21, %22, %cst_20 {dimension_numbers = #tpu.dot_dimension_numbers<[1], [0], [0], [1], [0, 0, 1, 1], [], []>} : vector<128x256xf32>, vector<256x128xf32>, vector<128x128xf32> -> vector<128x128xf32>
    %c0_21 = arith.constant 0 : index
    %c0_22 = arith.constant 0 : index
    %24 = vector.load %arg9[%c0_21, %c0_22] : memref<1x128xf32, #tpu.memory_space<vmem>>, vector<1x1xf32>
    %25 = tpu.transpose %23, [1, 0] : vector<128x128xf32> -> vector<128x128xf32>
    %26 = vector.extract_strided_slice %25 {offsets = [0, 0], sizes = [1, 128], strides = [1, 1]} : vector<128x128xf32> to vector<1x128xf32>
    %27 = vector.broadcast %24 : vector<1x1xf32> to vector<1x128xf32>
    %28 = arith.addf %26, %27 : vector<1x128xf32>
    %cst_23 = arith.constant 0.000000e+00 : f32
    %29 = vector.broadcast %cst_23 : f32 to vector<1x128xf32>
    %30 = arith.subf %29, %28 : vector<1x128xf32>
    %31 = math.exp %30 : vector<1x128xf32>
    %cst_24 = arith.constant 1.000000e+00 : f32
    %32 = vector.broadcast %cst_24 : f32 to vector<1x128xf32>
    %33 = arith.addf %32, %31 : vector<1x128xf32>
    %cst_25 = arith.constant 1.000000e+00 : f32
    %34 = vector.broadcast %cst_25 : f32 to vector<1x128xf32>
    %35 = arith.divf %34, %33 : vector<1x128xf32>
    %c0_26 = arith.constant 0 : index
    %c0_27 = arith.constant 0 : index
    %36 = vector.load %arg10[%c0_26, %c0_27] : memref<1x128xf32, #tpu.memory_space<vmem>>, vector<1x128xf32>
    tpu.vector_store %arg10[%c0_26, %c0_27], %35 {strides = array<i32>} : memref<1x128xf32, #tpu.memory_space<vmem>>, vector<1x128xf32>,
    return
  }
  func.func @transform_0(%arg0: i32) -> (i32, i32) {
    %c0_i32 = arith.constant 0 : i32
    %c0_i32_0 = arith.constant 0 : i32
    return %arg0, %c0_i32 : i32, i32
  }
  func.func @transform_1(%arg0: i32) -> (i32, i32) {
    %c0_i32 = arith.constant 0 : i32
    %c0_i32_0 = arith.constant 0 : i32
    %c0_i32_1 = arith.constant 0 : i32
    return %c0_i32, %c0_i32_0 : i32, i32
  }
  func.func @transform_2(%arg0: i32) -> (i32, i32) {
    %c0_i32 = arith.constant 0 : i32
    %c0_i32_0 = arith.constant 0 : i32
    %c0_i32_1 = arith.constant 0 : i32
    return %c0_i32, %c0_i32_0 : i32, i32
  }
  func.func @transform_3(%arg0: i32) -> (i32, i32) {
    %c0_i32 = arith.constant 0 : i32
    %c0_i32_0 = arith.constant 0 : i32
    %c0_i32_1 = arith.constant 0 : i32
    return %c0_i32, %c0_i32_0 : i32, i32
  }
  func.func @transform_4(%arg0: i32) -> (i32, i32) {
    %c0_i32 = arith.constant 0 : i32
    %c0_i32_0 = arith.constant 0 : i32
    %c0_i32_1 = arith.constant 0 : i32
    return %c0_i32, %c0_i32_0 : i32, i32
  }
  func.func @transform_5(%arg0: i32) -> (i32, i32) {
    %c0_i32 = arith.constant 0 : i32
    %c0_i32_0 = arith.constant 0 : i32
    %c0_i32_1 = arith.constant 0 : i32
    return %c0_i32, %c0_i32_0 : i32, i32
  }
  func.func @transform_6(%arg0: i32) -> (i32, i32) {
    %c0_i32 = arith.constant 0 : i32
    %c0_i32_0 = arith.constant 0 : i32
    %c0_i32_1 = arith.constant 0 : i32
    return %c0_i32, %c0_i32_0 : i32, i32
  }
  func.func @transform_7(%arg0: i32) -> (i32, i32) {
    %c0_i32 = arith.constant 0 : i32
    %c0_i32_0 = arith.constant 0 : i32
    %c0_i32_1 = arith.constant 0 : i32
    return %c0_i32, %c0_i32_0 : i32, i32
  }
  func.func @transform_8(%arg0: i32) -> (i32, i32) {
    %c0_i32 = arith.constant 0 : i32
    %c0_i32_0 = arith.constant 0 : i32
    %c0_i32_1 = arith.constant 0 : i32
    return %c0_i32, %c0_i32_0 : i32, i32
  }
  func.func @transform_9(%arg0: i32) -> (i32, i32) {
    %c0_i32 = arith.constant 0 : i32
    %c0_i32_0 = arith.constant 0 : i32
    return %c0_i32, %arg0 : i32, i32
  }
}

</mosaic_0001>

<bundles_post_ra>
// kernel: tpu_custom_call.1
= control target key start
LH: loop header
LB: loop body
LE: loop exit
PB: predicated region body
PF: predicated region fallthrough
CT: control target
= control target key end

     0   :  { %14 = vsyncpa [#allocation3], 0  ;;  %s2889_s0 = inlined_call_operand.vmem [shape: f32[128,100], index: 0, kind: input, shape index: {}]   ;;  %s2890_s1 = inlined_call_operand.hbm [shape: f32[100,256], index: 1, kind: input, shape index: {}]   ;;  %s2891_s2 = inlined_call_operand.vmem [shape: f32[1,256], index: 2, kind: input, shape index: {}]   ;;  %s2892_s3 = inlined_call_operand.hbm [shape: f32[256,512], index: 3, kind: input, shape index: {}]   ;;  %s2893_s4 = inlined_call_operand.hbm [shape: f32[1,512], index: 4, kind: input, shape index: {}]   ;;  %s2894_s5 = inlined_call_operand.hbm [shape: f32[512,256], index: 5, kind: input, shape index: {}]   ;;  %s2895_s6 = inlined_call_operand.hbm [shape: f32[1,256], index: 6, kind: input, shape index: {}]   ;;  %s2896_s7 = inlined_call_operand.vmem [shape: f32[256,128], index: 7, kind: input, shape index: {}]   ;;  %s2897_s8 = inlined_call_operand.vmem [shape: f32[1,128], index: 8, kind: input, shape index: {}]   ;;  %s2898_s9 = inlined_call_operand.hbm [shape: f32[1,128], index: 9, kind: output, shape index: {}]  }
   0x1   :  { %15 = vsyncpa [#allocation6], 0 }
   0x2   :  { %16 = vsyncpa [#allocation9], 0 }
   0x3   :  { %17 = vsyncpa [#allocation4], 0  ;;  %s2305_s30 = smov [#allocation5]   ;;  %s2165_s13 = scalar_lea.hbm %s2892_s3, 16384 }
   0x4   :  { %s39_s10 = sshll.u32 %s2305_s30, 4  ;;  %p2166_p0 = scmp.ne.s32.totalorder %s2892_s3, %s2165_s13  ;;  %s40_s10 = int_to_ptr.vmem [resolvable:$true] %s39_s10 }
   0x5   :  { %p2169_p1 = scmp.lt.u32.totalorder %s2165_s13, %s2892_s3 }
   0x7   :  { %p2171_p2 = pnand %p2169_p1, %p2166_p0 }
   0x9   :  { %2174 = shalt.err (!%p2171_p2)
}
   0xa   :  { %s2175_s18 = scalar_lea.vmem %s40_s10, 16384  ;;  %p2180_p4 = scmp.lt.s32.totalorder %s40_s10, %s40_s10 }
   0xb   :  { %p2176_p3 = scmp.ne.s32.totalorder %s40_s10, %s2175_s18  ;;  %p2181_p5 = scmp.lt.s32.totalorder %s2175_s18, %s2175_s18 }
   0xd   :  { %p2182_p6 = por %p2181_p5, %p2180_p4 }
   0xf   :  { %p2183_p7 = pnand %p2182_p6, %p2176_p3 }
  0x11   :  { %2186 = shalt.err (!%p2183_p7)
}
  0x12   :  { %s2306_s19 = smov 512   ;;  %s2307_s20 = smov 32  }
  0x13   :  { %45 = dma.hbm_to_vmem [thread:$0]  %s2892_s3, 16384, %s40_s10, [#allocation6], %s2306_s19, %s2306_s19, %s2307_s20  }
  0x14   :  { %s2308_s23 = smov [#allocation8]   ;;  %s2309_s25 = smov [#allocation2]  }
  0x15   :  { %s61_s24 = sshll.u32 %s2308_s23, 4  ;;  %s25_s26 = sshll.u32 %s2309_s25, 4  ;;  %s62_s24 = int_to_ptr.vmem [resolvable:$true] %s61_s24  ;;  %s26_s26 = int_to_ptr.vmem [resolvable:$true] %s25_s26 }
  0x16   :  { %s2187_s29 = scalar_lea.hbm %s2894_s5, 16384 }
  0x17   :  { %p2188_p8 = scmp.ne.s32.totalorder %s2894_s5, %s2187_s29  ;;  %p2191_p9 = scmp.lt.u32.totalorder %s2187_s29, %s2894_s5 }
  0x19   :  { %p2193_p10 = pnand %p2191_p9, %p2188_p8 }
  0x1b   :  { %2196 = shalt.err (!%p2193_p10)
}
  0x1c   :  { %s2197_s3 = scalar_lea.vmem %s62_s24, 16384  ;;  %p2202_p12 = scmp.lt.s32.totalorder %s62_s24, %s62_s24 }
  0x1d   :  { %p2198_p11 = scmp.ne.s32.totalorder %s62_s24, %s2197_s3  ;;  %p2203_p13 = scmp.lt.s32.totalorder %s2197_s3, %s2197_s3 }
  0x1f   :  { %p2204_p0 = por %p2203_p13, %p2202_p12 }
  0x21   :  { %p2205_p1 = pnand %p2204_p0, %p2198_p11 }
  0x23   :  { %2208 = shalt.err (!%p2205_p1)
}
  0x24   :  { %s2310_s10 = smov 256   ;;  %s2311_s14 = smov 16  }
  0x25   :  { %67 = dma.hbm_to_vmem [thread:$0]  %s2894_s5, 16384, %s62_s24, [#allocation9], %s2310_s10, %s2310_s10, %s2311_s14  }
  0x26   :  { %s2209_s19 = scalar_lea.hbm %s2890_s1, 3328 }
  0x27   :  { %p2210_p2 = scmp.ne.s32.totalorder %s2890_s1, %s2209_s19  ;;  %p2213_p3 = scmp.lt.u32.totalorder %s2209_s19, %s2890_s1 }
  0x29   :  { %p2215_p4 = pnand %p2213_p3, %p2210_p2 }
  0x2b   :  { %2218 = shalt.err (!%p2215_p4)
}
  0x2c   :  { %s2219_s25 = scalar_lea.vmem %s26_s26, 3328  ;;  %p2224_p6 = scmp.lt.s32.totalorder %s26_s26, %s26_s26 }
  0x2d   :  { %p2220_p5 = scmp.ne.s32.totalorder %s26_s26, %s2219_s25  ;;  %p2225_p7 = scmp.lt.s32.totalorder %s2219_s25, %s2219_s25 }
  0x2f   :  { %p2226_p8 = por %p2225_p7, %p2224_p6 }
  0x31   :  { %p2227_p9 = pnand %p2226_p8, %p2220_p5 }
  0x33   :  { %2230 = shalt.err (!%p2227_p9)
}
  0x34   :  { %31 = dma.hbm_to_vmem [thread:$0]  %s2890_s1, 3328, %s26_s26, [#allocation3], %s2310_s10, %s2310_s10, %s2311_s14  }
  0x35   :  { %s2312_s27 = smov [#allocation7]   ;;  %s2313_s29 = smov [#allocation10]  }
  0x36   :  { %s52_s28 = sshll.u32 %s2312_s27, 4  ;;  %s74_s30 = sshll.u32 %s2313_s29, 4  ;;  %s53_s28 = int_to_ptr.vmem [resolvable:$true] %s52_s28  ;;  %s75_s30 = int_to_ptr.vmem [resolvable:$true] %s74_s30 }
  0x37   :  { %s2231_s13 = scalar_lea.hbm %s2893_s4, 64 }
  0x38   :  { %p2232_p10 = scmp.ne.s32.totalorder %s2893_s4, %s2231_s13  ;;  %p2235_p11 = scmp.lt.u32.totalorder %s2231_s13, %s2893_s4 }
  0x3a   :  { %p2237_p12 = pnand %p2235_p11, %p2232_p10 }
  0x3c   :  { %2240 = shalt.err (!%p2237_p12)
}
  0x3d   :  { %s2241_s1 = scalar_lea.vmem %s53_s28, 64  ;;  %p2246_p0 = scmp.lt.s32.totalorder %s53_s28, %s53_s28 }
  0x3e   :  { %p2242_p13 = scmp.ne.s32.totalorder %s53_s28, %s2241_s1  ;;  %p2247_p1 = scmp.lt.s32.totalorder %s2241_s1, %s2241_s1 }
  0x40   :  { %p2248_p2 = por %p2247_p1, %p2246_p0 }
  0x42   :  { %p2249_p3 = pnand %p2248_p2, %p2242_p13 }
  0x44   :  { %2252 = shalt.err (!%p2249_p3)
}
  0x45   :  { %55 = dma.hbm_to_vmem [thread:$0]  %s2893_s4, 64, %s53_s28, [#allocation6]  }
  0x46   :  { %s2253_s19 = scalar_lea.hbm %s2895_s6, 32 }
  0x47   :  { %p2254_p4 = scmp.ne.s32.totalorder %s2895_s6, %s2253_s19  ;;  %p2257_p5 = scmp.lt.u32.totalorder %s2253_s19, %s2895_s6 }
  0x49   :  { %p2259_p6 = pnand %p2257_p5, %p2254_p4 }
  0x4b   :  { %2262 = shalt.err (!%p2259_p6)
}
  0x4c   :  { %s2263_s25 = scalar_lea.vmem %s75_s30, 32  ;;  %p2268_p8 = scmp.lt.s32.totalorder %s75_s30, %s75_s30 }
  0x4d   :  { %p2264_p7 = scmp.ne.s32.totalorder %s75_s30, %s2263_s25  ;;  %p2269_p9 = scmp.lt.s32.totalorder %s2263_s25, %s2263_s25 }
  0x4f   :  { %p2270_p10 = por %p2269_p9, %p2268_p8 }
  0x51   :  { %p2271_p11 = pnand %p2270_p10, %p2264_p7 }
  0x53   :  { %2274 = shalt.err (!%p2271_p11)
}
  0x54   :  { %77 = dma.hbm_to_vmem [thread:$0]  %s2895_s6, 32, %s75_s30, [#allocation9]  }
  0x55   :  { %2297 = dma.done.wait [#allocation3], 3328  }
  0x56   :  { %2298 = vsyncadd [#allocation3], 4294963968 }
  0x57   :  { %2299 = dma.done.wait [#allocation6], 16448  }
  0x58   :  { %2300 = vsyncadd [#allocation6], 4294950848 }
  0x59   :  { %2301 = dma.done.wait [#allocation9], 16416  }
  0x5a   :  { %2302 = vsyncadd [#allocation9], 4294950880  ;;  %v2314_v0 = vmov 0.0   ;;  %v114_v1 = vld [vmem:[#allocation2 + $0x8] sm:$0xff]  ;;  %v116_v2 = vld [vmem:[#allocation2 + $0x18] sm:$0xff]  ;;  %vm200_vm0 = vcmask 1043456  }
  0x5b   :  { %271 = vmatprep.mubr.f32.mxu0 %v2314_v0  ;;  %v113_v3 = vld [vmem:[#allocation2] sm:$0xff]  ;;  %v1772_v4 = vpack.c.bf16 %v116_v2, %v114_v1  ;;  %v115_v5 = vld [vmem:[#allocation2 + $0x10] sm:$0xff]  ;;  %v118_v6 = vld [vmem:[#allocation2 + $0x28] sm:$0xff]  ;;  %vm151_vm1 = vcmask 818176  }
  0x5c   :  { %v120_v7 = vld [vmem:[#allocation2 + $0x38] sm:$0xff]  ;;  %v1774_v8 = vpack.c.bf16 %v115_v5, %v113_v3  ;;  %v117_v10 = vld [vmem:[#allocation2 + $0x20] sm:$0xff]  ;;  %v119_v11 = vld [vmem:[#allocation2 + $0x30] sm:$0xff] }
  0x5d   :  { %v1776_v9 = vpack.c.bf16 %v120_v7, %v118_v6  ;;  %v122_v12 = vld [vmem:[#allocation2 + $0x48] sm:$0xff]  ;;  %1773 = vmatprep.subr.bf16.mxu0 %v1772_v4  ;;  %v124_v13 = vld [vmem:[#allocation2 + $0x58] sm:$0xff]  ;;  %v1778_v14 = vpack.c.bf16 %v119_v11, %v117_v10  ;;  %v121_v16 = vld [vmem:[#allocation2 + $0x40] sm:$0xff] }
  0x5e   :  { %1775 = vmatpush1.bf16.msra.mxu0 %v1774_v8  ;;  %v1780_v15 = vpack.c.bf16 %v124_v13, %v122_v12  ;;  %v123_v17 = vld [vmem:[#allocation2 + $0x50] sm:$0xff]  ;;  %v126_v18 = vld [vmem:[#allocation2 + $0x68] sm:$0xff]  ;;  %v128_v19 = vld [vmem:[#allocation2 + $0x78] sm:$0xff] }
  0x5f   :  { %1777 = vmatprep.subr.bf16.mxu0 %v1776_v9  ;;  %v1782_v20 = vpack.c.bf16 %v123_v17, %v121_v16  ;;  %v1784_v21 = vpack.c.bf16 %v128_v19, %v126_v18  ;;  %v125_v22 = vld [vmem:[#allocation2 + $0x60] sm:$0xff]  ;;  %v127_v23 = vld [vmem:[#allocation2 + $0x70] sm:$0xff]  ;;  %v130_v24 = vld [vmem:[#allocation2 + $0x88] sm:$0xff] }
  0x60   :  { %v132_v25 = vld [vmem:[#allocation2 + $0x98] sm:$0xff]  ;;  %v1786_v26 = vpack.c.bf16 %v127_v23, %v125_v22  ;;  %v129_v28 = vld [vmem:[#allocation2 + $0x80] sm:$0xff]  ;;  %v131_v29 = vld [vmem:[#allocation2 + $0x90] sm:$0xff] }
  0x61   :  { %v1788_v27 = vpack.c.bf16 %v132_v25, %v130_v24  ;;  %v134_v30 = vld [vmem:[#allocation2 + $0xa8] sm:$0xff]  ;;  %v136_v31 = vld [vmem:[#allocation2 + $0xb8] sm:$0xff]  ;;  %v400_v35 = vld [vmem:[#allocation5] sm:$0xff]  ;;  %v1790_v37 = vpack.c.bf16 %v131_v29, %v129_v28 }
  0x62   :  { %1779 = vmatpush1.bf16.msra.mxu0 %v1778_v14  ;;  %v401_v32 = vld [vmem:[#allocation5 + $0x8] sm:$0xff]  ;;  %v404_v36 = vld [vmem:[#allocation5 + $0x20] sm:$0xff]  ;;  %v1792_v40 = vpack.c.bf16 %v136_v31, %v134_v30  ;;  %v133_v41 = vld [vmem:[#allocation2 + $0xa0] sm:$0xff] }
  0x63   :  { %1781 = vmatprep.subr.bf16.mxu0 %v1780_v15  ;;  %v405_v33 = vld [vmem:[#allocation5 + $0x28] sm:$0xff]  ;;  %v1798_v38 = vpack.c.bf16 %v404_v36, %v400_v35  ;;  %v135_v42 = vld [vmem:[#allocation2 + $0xb0] sm:$0xff]  ;;  %v138_v53 = vld [vmem:[#allocation2 + $0xc8] sm:$0xf] }
  0x64   :  { %v1796_v34 = vpack.c.bf16 %v405_v33, %v401_v32  ;;  %v409_v39 = vld [vmem:[#allocation5 + $0x48] sm:$0xff]  ;;  %v408_v45 = vld [vmem:[#allocation5 + $0x40] sm:$0xff]  ;;  %v1794_v50 = vpack.c.bf16 %v135_v42, %v133_v41  ;;  %v403_v54 = vld [vmem:[#allocation5 + $0x18] sm:$0xff] }
  0x65   :  { %v413_v43 = vld [vmem:[#allocation5 + $0x68] sm:$0xff]  ;;  %v412_v46 = vld [vmem:[#allocation5 + $0x60] sm:$0xff]  ;;  %v407_v56 = vld [vmem:[#allocation5 + $0x38] sm:$0xff] }
  0x66   :  { %1783 = vmatpush1.bf16.msra.mxu0 %v1782_v20  ;;  %1797 = vmatprep.subr.bf16.mxu1 %v1796_v34  ;;  %v1800_v44 = vpack.c.bf16 %v413_v43, %v409_v39  ;;  %v1802_v47 = vpack.c.bf16 %v412_v46, %v408_v45  ;;  %v417_v48 = vld [vmem:[#allocation5 + $0x88] sm:$0xff]  ;;  %v416_v52 = vld [vmem:[#allocation5 + $0x80] sm:$0xff]  ;;  %v402_v60 = vld [vmem:[#allocation5 + $0x10] sm:$0xff]  ;;  %v1860_v5 = vpack.c.bf16 %v407_v56, %v403_v54 }
  0x67   :  { %1785 = vmatprep.subr.bf16.mxu0 %v1784_v21  ;;  %1799 = vmatpush1.bf16.msra.mxu1 %v1798_v38  ;;  %v421_v49 = vld [vmem:[#allocation5 + $0xa8] sm:$0xff]  ;;  %v420_v55 = vld [vmem:[#allocation5 + $0xa0] sm:$0xff]  ;;  %v406_v61 = vld [vmem:[#allocation5 + $0x30] sm:$0xff] }
  0x68   :  { %1801 = vmatprep.subr.bf16.mxu1 %v1800_v44  ;;  %v1804_v51 = vpack.c.bf16 %v421_v49, %v417_v48  ;;  %v1806_v57 = vpack.c.bf16 %v420_v55, %v416_v52  ;;  %v425_v58 = vld [vmem:[#allocation5 + $0xc8] sm:$0xff]  ;;  %v411_v62 = vld [vmem:[#allocation5 + $0x58] sm:$0xff]  ;;  %v424_v2 = vld [vmem:[#allocation5 + $0xc0] sm:$0xff]  ;;  %v1862_v9 = vpack.c.bf16 %v406_v61, %v402_v60 }
  0x69   :  { %v429_v59 = vld [vmem:[#allocation5 + $0xe8] sm:$0xff]  ;;  %v415_v1 = vld [vmem:[#allocation5 + $0x78] sm:$0xff]  ;;  %v428_v3 = vld [vmem:[#allocation5 + $0xe0] sm:$0xff] }
  0x6a   :  { %1787 = vmatpush1.bf16.msra.mxu0 %v1786_v26  ;;  %v1808_v63 = vpack.c.bf16 %v429_v59, %v425_v58  ;;  %v137_v4 = vld [vmem:[#allocation2 + $0xc0] sm:$0xf]  ;;  %v433_v6 = vld [vmem:[#allocation5 + $0x108] sm:$0xff]  ;;  %v1864_v10 = vpack.c.bf16 %v415_v1, %v411_v62  ;;  %v419_v13 = vld [vmem:[#allocation5 + $0x98] sm:$0xff]  ;;  %v1810_v14 = vpack.c.bf16 %v428_v3, %v424_v2 }
  0x6b   :  { %1789 = vmatprep.subr.bf16.mxu0 %v1788_v27  ;;  %1803 = vmatpush1.bf16.msra.mxu1 %v1802_v47  ;;  %v437_v7 = vld [vmem:[#allocation5 + $0x128] sm:$0xff]  ;;  %v97_v8 = vld [vmem:[%s2889_s0] sm:$0xff]  ;;  %v423_v15 = vld [vmem:[#allocation5 + $0xb8] sm:$0xff] }
  0x6c   :  { %1805 = vmatprep.subr.bf16.mxu1 %v1804_v51  ;;  %v410_v11 = vld [vmem:[#allocation5 + $0x50] sm:$0xff]  ;;  %v1812_v16 = vpack.c.bf16 %v437_v7, %v433_v6  ;;  %v432_v17 = vld [vmem:[#allocation5 + $0x100] sm:$0xff]  ;;  %v441_v19 = vld [vmem:[#allocation5 + $0x148] sm:$0xff]  ;;  %v1868_v23 = vpack.c.bf16 %v423_v15, %v419_v13 }
  0x6d   :  { %v414_v12 = vld [vmem:[#allocation5 + $0x70] sm:$0xff]  ;;  %v436_v18 = vld [vmem:[#allocation5 + $0x120] sm:$0xff]  ;;  %v445_v20 = vld [vmem:[#allocation5 + $0x168] sm:$0xff] }
  0x6e   :  { %1791 = vmatpush1.bf16.msra.mxu0 %v1790_v37  ;;  %v98_v21 = vld [vmem:[%s2889_s0 + $0x8] sm:$0xff]  ;;  %v1866_v22 = vpack.c.bf16 %v414_v12, %v410_v11  ;;  %v418_v24 = vld [vmem:[#allocation5 + $0x90] sm:$0xff]  ;;  %v1814_v27 = vpack.c.bf16 %v436_v18, %v432_v17  ;;  %v1816_v29 = vpack.c.bf16 %v445_v20, %v441_v19  ;;  %v440_v30 = vld [vmem:[#allocation5 + $0x140] sm:$0xff] }
  0x6f   :  { %1793 = vmatprep.subr.bf16.mxu0 %v1792_v40  ;;  %1807 = vmatpush1.bf16.msra.mxu1 %v1806_v57  ;;  %v422_v25 = vld [vmem:[#allocation5 + $0xb0] sm:$0xff]  ;;  %v427_v26 = vld [vmem:[#allocation5 + $0xd8] sm:$0xff]  ;;  %v444_v31 = vld [vmem:[#allocation5 + $0x160] sm:$0xff] }
  0x70   :  { %1809 = vmatprep.subr.bf16.mxu1 %v1808_v63  ;;  %v431_v28 = vld [vmem:[#allocation5 + $0xf8] sm:$0xff]  ;;  %v449_v32 = vld [vmem:[#allocation5 + $0x188] sm:$0xff]  ;;  %v99_v34 = vld [vmem:[%s2889_s0 + $0x10] sm:$0xff]  ;;  %v1870_v35 = vpack.c.bf16 %v422_v25, %v418_v24  ;;  %v1818_v40 = vpack.c.bf16 %v444_v31, %v440_v30 }
  0x71   :  { %v453_v33 = vld [vmem:[#allocation5 + $0x1a8] sm:$0xff]  ;;  %v1872_v36 = vpack.c.bf16 %v431_v28, %v427_v26  ;;  %v426_v37 = vld [vmem:[#allocation5 + $0xd0] sm:$0xff]  ;;  %v435_v39 = vld [vmem:[#allocation5 + $0x118] sm:$0xff] }
  0x72   :  { %1795 = vmatpush1.bf16.msra.mxu0 %v1794_v50  ;;  %v430_v38 = vld [vmem:[#allocation5 + $0xf0] sm:$0xff]  ;;  %v439_v41 = vld [vmem:[#allocation5 + $0x138] sm:$0xff]  ;;  %v1820_v42 = vpack.c.bf16 %v453_v33, %v449_v32  ;;  %v448_v43 = vld [vmem:[#allocation5 + $0x180] sm:$0xff] }
  0x73   :  { %1674 = vmatprep.subr.msk.mxu0 %vm200_vm0, %v138_v53  ;;  %1811 = vmatpush1.bf16.msra.mxu1 %v1810_v14  ;;  %v452_v44 = vld [vmem:[#allocation5 + $0x1a0] sm:$0xff]  ;;  %v457_v45 = vld [vmem:[#allocation5 + $0x1c8] sm:$0xff]  ;;  %v1874_v48 = vpack.c.bf16 %v430_v38, %v426_v37  ;;  %v1876_v49 = vpack.c.bf16 %v439_v41, %v435_v39  ;;  %v434_v50 = vld [vmem:[#allocation5 + $0x110] sm:$0xff] }
  0x74   :  { %1813 = vmatprep.subr.bf16.mxu1 %v1812_v16  ;;  %v461_v46 = vld [vmem:[#allocation5 + $0x1e8] sm:$0xff]  ;;  %v438_v51 = vld [vmem:[#allocation5 + $0x130] sm:$0xff]  ;;  %v443_v52 = vld [vmem:[#allocation5 + $0x158] sm:$0xff]  ;;  %v1822_v53 = vpack.c.bf16 %v452_v44, %v448_v43 }
  0x75   :  { %v100_v47 = vld [vmem:[%s2889_s0 + $0x18] sm:$0xff]  ;;  %v447_v54 = vld [vmem:[#allocation5 + $0x178] sm:$0xff]  ;;  %v1824_v55 = vpack.c.bf16 %v461_v46, %v457_v45  ;;  %v456_v56 = vld [vmem:[#allocation5 + $0x1c0] sm:$0xff]  ;;  %v1878_v61 = vpack.c.bf16 %v438_v51, %v434_v50 }
  0x76   :  { %1675 = vmatpush1.msk.msra.mxu0 %vm200_vm0, %v137_v4  ;;  %v460_v57 = vld [vmem:[#allocation5 + $0x1e0] sm:$0xff]  ;;  %v465_v58 = vld [vmem:[#allocation5 + $0x208] sm:$0xff]  ;;  %v101_v60 = vld [vmem:[%s2889_s0 + $0x20] sm:$0xff]  ;;  %v1880_v62 = vpack.c.bf16 %v447_v54, %v443_v52 }
  0x77   :  { %1676 = vmatmul.mubr.msk.f32.vlgmr.msra.gmra.mrb[0].mxu0 %vm151_vm1, %v97_v8  ;;  %1861 = vmatprep.subr.bf16.mxu0 %v1860_v5  ;;  %v469_v59 = vld [vmem:[#allocation5 + $0x228] sm:$0xff]  ;;  %v442_v63 = vld [vmem:[#allocation5 + $0x150] sm:$0xff]  ;;  %v451_v2 = vld [vmem:[#allocation5 + $0x198] sm:$0xff]  ;;  %v1826_v3 = vpack.c.bf16 %v460_v57, %v456_v56 }
  0x78   :  { %277 = vmatprep.mubr.f32.mxu0 %v2314_v0  ;;  %1863 = vmatpush1.bf16.msra.mxu0 %v1862_v9  ;;  %v446_v1 = vld [vmem:[#allocation5 + $0x170] sm:$0xff]  ;;  %v455_v4 = vld [vmem:[#allocation5 + $0x1b8] sm:$0xff]  ;;  %v1828_v5 = vpack.c.bf16 %v469_v59, %v465_v58  ;;  %v464_v6 = vld [vmem:[#allocation5 + $0x200] sm:$0xff] }
  0x79   :  { %1865 = vmatprep.subr.bf16.mxu0 %v1864_v10  ;;  %1815 = vmatpush1.bf16.msra.mxu1 %v1814_v27  ;;  %v468_v7 = vld [vmem:[#allocation5 + $0x220] sm:$0xff]  ;;  %v473_v8 = vld [vmem:[#allocation5 + $0x248] sm:$0xff]  ;;  %v102_v10 = vld [vmem:[%s2889_s0 + $0x28] sm:$0xff]  ;;  %v1882_v11 = vpack.c.bf16 %v446_v1, %v442_v63  ;;  %v1884_v12 = vpack.c.bf16 %v455_v4, %v451_v2 }
  0x7a   :  { %1817 = vmatprep.subr.bf16.mxu1 %v1816_v29  ;;  %v477_v9 = vld [vmem:[#allocation5 + $0x268] sm:$0xff]  ;;  %v450_v13 = vld [vmem:[#allocation5 + $0x190] sm:$0xff]  ;;  %v459_v15 = vld [vmem:[#allocation5 + $0x1d8] sm:$0xff]  ;;  %v1830_v16 = vpack.c.bf16 %v468_v7, %v464_v6 }
  0x7b   :  { %1677 = vmatmul.mubr.msk.f32.gmra.mrb[2].mxu0 %vm151_vm1, %v98_v21  ;;  %v454_v14 = vld [vmem:[#allocation5 + $0x1b0] sm:$0xff]  ;;  %v463_v17 = vld [vmem:[#allocation5 + $0x1f8] sm:$0xff]  ;;  %v1832_v18 = vpack.c.bf16 %v477_v9, %v473_v8  ;;  %v472_v19 = vld [vmem:[#allocation5 + $0x240] sm:$0xff] }
  0x7c   :  { %283 = vmatprep.mubr.f32.mxu0 %v2314_v0  ;;  %1867 = vmatpush1.bf16.msra.mxu0 %v1866_v22  ;;  %v476_v20 = vld [vmem:[#allocation5 + $0x260] sm:$0xff]  ;;  %v481_v21 = vld [vmem:[#allocation5 + $0x288] sm:$0xff]  ;;  %v1886_v24 = vpack.c.bf16 %v454_v14, %v450_v13  ;;  %v1888_v25 = vpack.c.bf16 %v463_v17, %v459_v15  ;;  %v458_v26 = vld [vmem:[#allocation5 + $0x1d0] sm:$0xff] }
  0x7d   :  { %1869 = vmatprep.subr.bf16.mxu0 %v1868_v23  ;;  %1819 = vmatpush1.bf16.msra.mxu1 %v1818_v40  ;;  %v485_v22 = vld [vmem:[#allocation5 + $0x2a8] sm:$0xff]  ;;  %v103_v23 = vld [vmem:[%s2889_s0 + $0x30] sm:$0xff]  ;;  %v462_v27 = vld [vmem:[#allocation5 + $0x1f0] sm:$0xff]  ;;  %v1834_v29 = vpack.c.bf16 %v476_v20, %v472_v19 }
  0x7e   :  { %1821 = vmatprep.subr.bf16.mxu1 %v1820_v42  ;;  %v467_v28 = vld [vmem:[#allocation5 + $0x218] sm:$0xff]  ;;  %v1836_v31 = vpack.c.bf16 %v485_v22, %v481_v21  ;;  %v480_v32 = vld [vmem:[#allocation5 + $0x280] sm:$0xff]  ;;  %v1890_v37 = vpack.c.bf16 %v462_v27, %v458_v26  ;;  %v466_v39 = vld [vmem:[#allocation5 + $0x210] sm:$0xff] }
  0x7f   :  { %1678 = vmatmul.mubr.msk.f32.gmra.mrb[4].mxu0 %vm151_vm1, %v99_v34  ;;  %v471_v30 = vld [vmem:[#allocation5 + $0x238] sm:$0xff]  ;;  %v484_v33 = vld [vmem:[#allocation5 + $0x2a0] sm:$0xff]  ;;  %v489_v34 = vld [vmem:[#allocation5 + $0x2c8] sm:$0xff] }
  0x80   :  { %289 = vmatprep.mubr.f32.mxu0 %v2314_v0  ;;  %1871 = vmatpush1.bf16.msra.mxu0 %v1870_v35  ;;  %v493_v35 = vld [vmem:[#allocation5 + $0x2e8] sm:$0xff]  ;;  %v1892_v38 = vpack.c.bf16 %v471_v30, %v467_v28  ;;  %v470_v40 = vld [vmem:[#allocation5 + $0x230] sm:$0xff]  ;;  %v475_v41 = vld [vmem:[#allocation5 + $0x258] sm:$0xff]  ;;  %v1838_v42 = vpack.c.bf16 %v484_v33, %v480_v32 }
  0x81   :  { %1873 = vmatprep.subr.bf16.mxu0 %v1872_v36  ;;  %1823 = vmatpush1.bf16.msra.mxu1 %v1822_v53  ;;  %v104_v36 = vld [vmem:[%s2889_s0 + $0x38] sm:$0xff]  ;;  %v479_v43 = vld [vmem:[#allocation5 + $0x278] sm:$0xff]  ;;  %v1840_v44 = vpack.c.bf16 %v493_v35, %v489_v34  ;;  %v488_v45 = vld [vmem:[#allocation5 + $0x2c0] sm:$0xff]  ;;  %v1894_v50 = vpack.c.bf16 %v470_v40, %v466_v39 }
  0x82   :  { %1825 = vmatprep.subr.bf16.mxu1 %v1824_v55  ;;  %v492_v46 = vld [vmem:[#allocation5 + $0x2e0] sm:$0xff]  ;;  %v1896_v51 = vpack.c.bf16 %v479_v43, %v475_v41  ;;  %v474_v52 = vld [vmem:[#allocation5 + $0x250] sm:$0xff]  ;;  %v483_v54 = vld [vmem:[#allocation5 + $0x298] sm:$0xff] }
  0x83   :  { %1679 = vmatmul.mubr.msk.f32.gmra.mrb[6].mxu0 %vm151_vm1, %v100_v47  ;;  %v497_v47 = vld [vmem:[#allocation5 + $0x308] sm:$0xff]  ;;  %v478_v53 = vld [vmem:[#allocation5 + $0x270] sm:$0xff]  ;;  %v1842_v55 = vpack.c.bf16 %v492_v46, %v488_v45  ;;  %v487_v56 = vld [vmem:[#allocation5 + $0x2b8] sm:$0xff] }
  0x84   :  { %295 = vmatprep.mubr.f32.mxu0 %v2314_v0  ;;  %1875 = vmatpush1.bf16.msra.mxu0 %v1874_v48  ;;  %v501_v48 = vld [vmem:[#allocation5 + $0x328] sm:$0xff]  ;;  %v496_v58 = vld [vmem:[#allocation5 + $0x300] sm:$0xff]  ;;  %v1898_v63 = vpack.c.bf16 %v478_v53, %v474_v52  ;;  %v1900_v1 = vpack.c.bf16 %v487_v56, %v483_v54  ;;  %v482_v2 = vld [vmem:[#allocation5 + $0x290] sm:$0xff] }
  0x85   :  { %1877 = vmatprep.subr.bf16.mxu0 %v1876_v49  ;;  %1827 = vmatpush1.bf16.msra.mxu1 %v1826_v3  ;;  %v105_v49 = vld [vmem:[%s2889_s0 + $0x40] sm:$0xff]  ;;  %v1844_v57 = vpack.c.bf16 %v501_v48, %v497_v47  ;;  %v500_v59 = vld [vmem:[#allocation5 + $0x320] sm:$0xff]  ;;  %v491_v4 = vld [vmem:[#allocation5 + $0x2d8] sm:$0xff] }
  0x86   :  { %1829 = vmatprep.subr.bf16.mxu1 %v1828_v5  ;;  %v486_v3 = vld [vmem:[#allocation5 + $0x2b0] sm:$0xff]  ;;  %v1846_v5 = vpack.c.bf16 %v500_v59, %v496_v58  ;;  %v495_v6 = vld [vmem:[#allocation5 + $0x2f8] sm:$0xff]  ;;  %v504_v8 = vld [vmem:[#allocation5 + $0x340] sm:$0xff] }
  0x87   :  { %1680 = vmatmul.mubr.msk.f32.gmra.mrb[8].mxu0 %vm151_vm1, %v101_v60  ;;  %v505_v60 = vld [vmem:[#allocation5 + $0x348] sm:$0xff]  ;;  %v508_v9 = vld [vmem:[#allocation5 + $0x360] sm:$0xff]  ;;  %v1902_v13 = vpack.c.bf16 %v486_v3, %v482_v2  ;;  %v1904_v14 = vpack.c.bf16 %v495_v6, %v491_v4  ;;  %v490_v15 = vld [vmem:[#allocation5 + $0x2d0] sm:$0xff] }
  0x88   :  { %301 = vmatprep.mubr.f32.mxu0 %v2314_v0  ;;  %1879 = vmatpush1.bf16.msra.mxu0 %v1878_v61  ;;  %v509_v61 = vld [vmem:[#allocation5 + $0x368] sm:$0xff]  ;;  %v1850_v17 = vpack.c.bf16 %v508_v9, %v504_v8  ;;  %v503_v19 = vld [vmem:[#allocation5 + $0x338] sm:$0xff]  ;;  %v109_v28 = vld [vmem:[%s2889_s0 + $0x60] sm:$0xff] }
  0x89   :  { %1881 = vmatprep.subr.bf16.mxu0 %v1880_v62  ;;  %1831 = vmatpush1.bf16.msra.mxu1 %v1830_v16  ;;  %v106_v62 = vld [vmem:[%s2889_s0 + $0x48] sm:$0xff]  ;;  %v1848_v7 = vpack.c.bf16 %v509_v61, %v505_v60  ;;  %v494_v16 = vld [vmem:[#allocation5 + $0x2f0] sm:$0xff]  ;;  %v108_v21 = vld [vmem:[%s2889_s0 + $0x58] sm:$0xff]  ;;  %v141_v60 = vlaneseq }
  0x8a   :  { %1833 = vmatprep.subr.bf16.mxu1 %v1832_v18  ;;  %v499_v18 = vld [vmem:[#allocation5 + $0x318] sm:$0xff]  ;;  %v1906_v22 = vpack.c.bf16 %v494_v16, %v490_v15  ;;  %v510_v32 = vld [vmem:[#allocation5 + $0x370] sm:$0xff]  ;;  %v112_v39 = vld [vmem:[%s2889_s0 + $0x78] sm:$0xff] }
  0x8b   :  { %1681 = vmatmul.mubr.msk.f32.gmra.mrb[10].mxu0 %vm151_vm1, %v102_v10  ;;  %v513_v10 = vld [vmem:[#allocation5 + $0x388] sm:$0xff]  ;;  %v507_v26 = vld [vmem:[#allocation5 + $0x358] sm:$0xff]  ;;  %v512_v40 = vld [vmem:[#allocation5 + $0x380] sm:$0xff]  ;;  %v2509_v61 = vshrl.u32 %v141_v60, 7 }
  0x8c   :  { %307 = vmatprep.mubr.f32.mxu0 %v2314_v0  ;;  %1883 = vmatpush1.bf16.msra.mxu0 %v1882_v11  ;;  %v517_v11 = vld [vmem:[#allocation5 + $0x3a8] sm:$0xff]  ;;  %v511_v27 = vld [vmem:[#allocation5 + $0x378] sm:$0xff]  ;;  %v516_v41 = vld [vmem:[#allocation5 + $0x3a0] sm:$0xff] }
  0x8d   :  { %1885 = vmatprep.subr.bf16.mxu0 %v1884_v12  ;;  %1835 = vmatpush1.bf16.msra.mxu1 %v1834_v29  ;;  %v107_v12 = vld [vmem:[%s2889_s0 + $0x50] sm:$0xff]  ;;  %v1852_v20 = vpack.c.bf16 %v517_v11, %v513_v10  ;;  %v1912_v30 = vpack.c.bf16 %v511_v27, %v507_v26  ;;  %v515_v33 = vld [vmem:[#allocation5 + $0x398] sm:$0xff]  ;;  %v1854_v43 = vpack.c.bf16 %v516_v41, %v512_v40  ;;  %v521_v46 = vld [vmem:[#allocation5 + $0x3c8] sm:$0xff] }
  0x8e   :  { %1837 = vmatprep.subr.bf16.mxu1 %v1836_v31  ;;  %v506_v31 = vld [vmem:[#allocation5 + $0x350] sm:$0xff]  ;;  %v519_v34 = vld [vmem:[#allocation5 + $0x3b8] sm:$0xff]  ;;  %v525_v47 = vld [vmem:[#allocation5 + $0x3e8] sm:$0xff] }
  0x8f   :  { %1682 = vmatmul.mubr.msk.f32.gmra.mrb[12].mxu0 %vm151_vm1, %v103_v23  ;;  %v1908_v23 = vpack.c.bf16 %v503_v19, %v499_v18  ;;  %v110_v35 = vld [vmem:[%s2889_s0 + $0x68] sm:$0xff]  ;;  %v522_v54 = vld [vmem:[#allocation5 + $0x3d0] sm:$0xff]  ;;  %v940_v19 = vld [vmem:[#allocation8 + $0x20] sm:$0xff] }
  0x90   :  { %313 = vmatprep.mubr.f32.mxu0 %v2314_v0  ;;  %1887 = vmatpush1.bf16.msra.mxu0 %v1886_v24  ;;  %v498_v24 = vld [vmem:[#allocation5 + $0x310] sm:$0xff]  ;;  %v523_v48 = vld [vmem:[#allocation5 + $0x3d8] sm:$0xff] }
  0x91   :  { %1889 = vmatprep.subr.bf16.mxu0 %v1888_v25  ;;  %1839 = vmatpush1.bf16.msra.mxu1 %v1838_v42  ;;  %v502_v25 = vld [vmem:[#allocation5 + $0x330] sm:$0xff]  ;;  %v939_v58 = vld [vmem:[#allocation8 + $0x18] sm:$0xff] }
  0x92   :  { %1841 = vmatprep.subr.bf16.mxu1 %v1840_v44  ;;  %v1910_v29 = vpack.c.bf16 %v502_v25, %v498_v24  ;;  %v514_v42 = vld [vmem:[#allocation5 + $0x390] sm:$0xff]  ;;  %v943_v11 = vld [vmem:[#allocation8 + $0x38] sm:$0xff] }
  0x93   :  { %1683 = vmatmul.mubr.msk.f32.gmra.mrb[14].mxu0 %vm151_vm1, %v104_v36  ;;  %v1914_v36 = vpack.c.bf16 %v510_v32, %v506_v31  ;;  %v518_v44 = vld [vmem:[#allocation5 + $0x3b0] sm:$0xff]  ;;  %v944_v31 = vld [vmem:[#allocation8 + $0x40] sm:$0xff] }
  0x94   :  { %319 = vmatprep.mubr.f32.mxu0 %v2314_v0  ;;  %1891 = vmatpush1.bf16.msra.mxu0 %v1890_v37  ;;  %v1916_v37 = vpack.c.bf16 %v519_v34, %v515_v33  ;;  %v1918_v45 = vpack.c.bf16 %v518_v44, %v514_v42  ;;  %v938_v8 = vld [vmem:[#allocation8 + $0x10] sm:$0xff]  ;;  %v941_v10 = vld [vmem:[#allocation8 + $0x28] sm:$0xff] }
  0x95   :  { %1893 = vmatprep.subr.bf16.mxu0 %v1892_v38  ;;  %1843 = vmatpush1.bf16.msra.mxu1 %v1842_v55  ;;  %v111_v38 = vld [vmem:[%s2889_s0 + $0x70] sm:$0xff]  ;;  %v526_v55 = vld [vmem:[#allocation5 + $0x3f0] sm:$0xff]  ;;  %v1928_v18 = vpack.c.bf16 %v943_v11, %v941_v10 }
  0x96   :  { %1845 = vmatprep.subr.bf16.mxu1 %v1844_v57  ;;  %v1922_v56 = vpack.c.bf16 %v526_v55, %v522_v54  ;;  %v937_v57 = vld [vmem:[#allocation8 + $0x8] sm:$0xff]  ;;  %v946_v32 = vld [vmem:[#allocation8 + $0x50] sm:$0xff]  ;;  %v952_v54 = vld [vmem:[#allocation8 + $0x80] sm:$0xff] }
  0x97   :  { %1684 = vmatmul.mubr.msk.f32.gmra.mrb[16].mxu0 %vm151_vm1, %v105_v49  ;;  %v1856_v49 = vpack.c.bf16 %v525_v47, %v521_v46  ;;  %v1924_v59 = vpack.c.bf16 %v939_v58, %v937_v57  ;;  %v949_v34 = vld [vmem:[#allocation8 + $0x68] sm:$0xff]  ;;  %v950_v44 = vld [vmem:[#allocation8 + $0x70] sm:$0xff]  ;;  %v955_v47 = vld [vmem:[#allocation8 + $0x98] sm:$0xff] }
  0x98   :  { %325 = vmatprep.mubr.f32.mxu0 %v2314_v0  ;;  %1895 = vmatpush1.bf16.msra.mxu0 %v1894_v50  ;;  %v527_v50 = vld [vmem:[#allocation5 + $0x3f8] sm:$0xff]  ;;  %v953_v46 = vld [vmem:[#allocation8 + $0x88] sm:$0xff] }
  0x99   :  { %1897 = vmatprep.subr.bf16.mxu0 %v1896_v51  ;;  %1847 = vmatpush1.bf16.msra.mxu1 %v1846_v5  ;;  %v524_v51 = vld [vmem:[#allocation5 + $0x3e0] sm:$0xff]  ;;  %v1920_v52 = vpack.c.bf16 %v527_v50, %v523_v48  ;;  %v954_v55 = vld [vmem:[#allocation8 + $0x90] sm:$0xff]  ;;  %v957_v57 = vld [vmem:[#allocation8 + $0xa8] sm:$0xff] }
  0x9a   :  { %1849 = vmatprep.subr.bf16.mxu1 %v1848_v7  ;;  %v936_v7 = vld [vmem:[#allocation8] sm:$0xff]  ;;  %v959_v58 = vld [vmem:[#allocation8 + $0xb8] sm:$0xff]  ;;  %v961_v11 = vld [vmem:[#allocation8 + $0xc8] sm:$0xff] }
  0x9b   :  { %1685 = vmatmul.mubr.msk.f32.gmra.mrb[18].mxu0 %vm151_vm1, %v106_v62  ;;  %v2512_v62 = vsub.s32 0, %v2509_v61 }
  0x9c   :  { %331 = vmatprep.mubr.f32.mxu0 %v2314_v0  ;;  %1899 = vmatpush1.bf16.msra.mxu0 %v1898_v63  ;;  %v139_v63 = vld [vmem:[%s2891_s2] sm:$0x3] }
  0x9d   :  { %1901 = vmatprep.subr.bf16.mxu0 %v1900_v1  ;;  %1851 = vmatpush1.bf16.msra.mxu1 %v1850_v17  ;;  %v2518_v1 = vsub.s32 1, %v2509_v61  ;;  %v2521_v2 = vrot.slane %v139_v63, %v2512_v62 }
  0x9e   :  { %1853 = vmatprep.subr.bf16.mxu1 %v1852_v20  ;;  %v942_v20 = vld [vmem:[#allocation8 + $0x30] sm:$0xff] }
  0x9f   :  { %1686 = vmatmul.mubr.msk.f32.gmra.mrb[20].mxu0 %vm151_vm1, %v107_v12  ;;  %v2524_v3 = vrot.slane %v139_v63, %v2518_v1  ;;  %v1930_v26 = vpack.c.bf16 %v942_v20, %v940_v19  ;;  %v1942_v63 = vpack.c.bf16 %v954_v55, %v952_v54  ;;  %v960_v20 = vld [vmem:[#allocation8 + $0xc0] sm:$0xff] }
  0xa0   :  { %337 = vmatprep.mubr.f32.mxu0 %v2314_v0  ;;  %1903 = vmatpush1.bf16.msra.mxu0 %v1902_v13  ;;  %v972_v55 = vld [vmem:[#allocation8 + $0x120] sm:$0xff] }
  0xa1   :  { %1905 = vmatprep.subr.bf16.mxu0 %v1904_v14  ;;  %1855 = vmatpush1.bf16.msra.mxu1 %v1854_v43  ;;  %v1926_v14 = vpack.c.bf16 %v938_v8, %v936_v7  ;;  %v948_v43 = vld [vmem:[#allocation8 + $0x60] sm:$0xff]  ;;  %v1944_v7 = vpack.c.bf16 %v959_v58, %v957_v57  ;;  %v977_v58 = vld [vmem:[#allocation8 + $0x148] sm:$0xff] }
  0xa2   :  { %1857 = vmatprep.subr.bf16.mxu1 %v1856_v49  ;;  %v1938_v50 = vpack.c.bf16 %v950_v44, %v948_v43  ;;  %v956_v8 = vld [vmem:[#allocation8 + $0xa0] sm:$0xff] }
  0xa3   :  { %1687 = vmatmul.mubr.msk.f32.gmra.mrb[22].mxu0 %vm151_vm1, %v108_v21  ;;  %v968_v44 = vld [vmem:[#allocation8 + $0x100] sm:$0xff] }
  0xa4   :  { %343 = vmatprep.mubr.f32.mxu0 %v2314_v0  ;;  %1907 = vmatpush1.bf16.msra.mxu0 %v1906_v22  ;;  %v945_v22 = vld [vmem:[#allocation8 + $0x48] sm:$0xff] }
  0xa5   :  { %1909 = vmatprep.subr.bf16.mxu0 %v1908_v23  ;;  %v947_v23 = vld [vmem:[#allocation8 + $0x58] sm:$0xff] }
  0xa7   :  { %1688 = vmatmul.mubr.msk.f32.gmra.mrb[24].mxu0 %vm151_vm1, %v109_v28 }
  0xa8   :  { %349 = vmatprep.mubr.f32.mxu0 %v2314_v0  ;;  %1911 = vmatpush1.bf16.msra.mxu0 %v1910_v29 }
  0xa9   :  { %1913 = vmatprep.subr.bf16.mxu0 %v1912_v30  ;;  %v1932_v30 = vpack.c.bf16 %v947_v23, %v945_v22  ;;  %v965_v23 = vld [vmem:[#allocation8 + $0xe8] sm:$0xff] }
  0xab   :  { %1689 = vmatmul.mubr.msk.f32.gmra.mrb[26].mxu0 %vm151_vm1, %v110_v35  ;;  %v951_v35 = vld [vmem:[#allocation8 + $0x78] sm:$0xff] }
  0xac   :  { %355 = vmatprep.mubr.f32.mxu0 %v2314_v0  ;;  %1915 = vmatpush1.bf16.msra.mxu0 %v1914_v36  ;;  %v1936_v42 = vpack.c.bf16 %v951_v35, %v949_v34  ;;  %v969_v35 = vld [vmem:[#allocation8 + $0x108] sm:$0xff] }
  0xad   :  { %1917 = vmatprep.subr.bf16.mxu0 %v1916_v37 }
  0xaf   :  { %1690 = vmatmul.mubr.msk.f32.gmra.mrb[28].mxu0 %vm151_vm1, %v111_v38  ;;  %v1934_v38 = vpack.c.bf16 %v946_v32, %v944_v31  ;;  %v964_v32 = vld [vmem:[#allocation8 + $0xe0] sm:$0xff] }
  0xb0   :  { %361 = vmatprep.mubr.f32.mxu0 %v2314_v0  ;;  %1919 = vmatpush1.bf16.msra.mxu0 %v1918_v45  ;;  %v520_v0 = vld [vmem:[#allocation5 + $0x3c0] sm:$0xff] }
  0xb1   :  { %v1858_v53 = vpack.c.bf16 %v524_v51, %v520_v0  ;;  %1921 = vmatprep.subr.bf16.mxu0 %v1920_v52 }
  0xb3   :  { %1691 = vmatmul.mubr.msk.f32.gmra.mrb[30].mxu0 %vm151_vm1, %v112_v39  ;;  %1859 = vmatpush1.bf16.msra.mxu1 %v1858_v53  ;;  %v1940_v53 = vpack.c.bf16 %v955_v47, %v953_v46  ;;  %v973_v47 = vld [vmem:[#allocation8 + $0x128] sm:$0xff] }
  0xb4   :  { %1923 = vmatpush1.bf16.msra.mxu0 %v1922_v56  ;;  %1925 = vmatprep.subr.bf16.mxu1 %v1924_v59 }
 0x14a   :  { %v273_v4 = vpop.f32.mrb[0].mxu0 }
 0x14b   :  { %v274_v5 = vadd.f32 %v273_v4, %v2521_v2  ;;  %v275_v6 = vpop.f32.mrb[1].mxu0 }
 0x14c   :  { %v276_v9 = vadd.f32 %v275_v6, %v2524_v3 }
 0x14d   :  { %v368_v15 = vmax.f32 %v274_v5, 0.0 }
 0x14e   :  { %v369_v12 = vmax.f32 %v276_v9, 0.0  ;;  %v279_v13 = vpop.f32.mrb[2].mxu0  ;;  %v958_v9 = vld [vmem:[#allocation8 + $0xb0] sm:$0xff] }
 0x14f   :  { %v280_v16 = vadd.f32 %v279_v13, %v2521_v2  ;;  %v281_v17 = vpop.f32.mrb[3].mxu0 }
 0x150   :  { %v282_v21 = vadd.f32 %v281_v17, %v2524_v3  ;;  %614 = vmatprep.mubr.f32.mxu1 %v369_v12  ;;  %775 = vmatprep.mubr.f32.mxu0 %v369_v12  ;;  %v963_v12 = vld [vmem:[#allocation8 + $0xd8] sm:$0xff] }
 0x151   :  { %615 = vmatmul.mubr.f32.vlgmr.msra.gmra.mrb[0].mxu1 %v368_v15  ;;  %776 = vmatmul.mubr.f32.vlgmr.msra.gmra.mrb[32].mxu0 %v368_v15  ;;  %v370_v27 = vmax.f32 %v280_v16, 0.0  ;;  %v1946_v15 = vpack.c.bf16 %v958_v9, %v956_v8  ;;  %v1948_v19 = vpack.c.bf16 %v963_v12, %v961_v11  ;;  %v976_v9 = vld [vmem:[#allocation8 + $0x140] sm:$0xff]  ;;  %v981_v12 = vld [vmem:[#allocation8 + $0x168] sm:$0xff] }
 0x152   :  { %v371_v24 = vmax.f32 %v282_v21, 0.0  ;;  %v285_v25 = vpop.f32.mrb[4].mxu0  ;;  %1927 = vmatpush1.bf16.msra.mxu1 %v1926_v14  ;;  %v962_v21 = vld [vmem:[#allocation8 + $0xd0] sm:$0xff] }
 0x153   :  { %v286_v28 = vadd.f32 %v285_v25, %v2521_v2  ;;  %v287_v29 = vpop.f32.mrb[5].mxu0  ;;  %1929 = vmatprep.subr.bf16.mxu1 %v1928_v18 }
 0x154   :  { %v288_v33 = vadd.f32 %v287_v29, %v2524_v3  ;;  %620 = vmatprep.mubr.f32.mxu1 %v371_v24  ;;  %781 = vmatprep.mubr.f32.mxu0 %v371_v24  ;;  %v967_v24 = vld [vmem:[#allocation8 + $0xf8] sm:$0xff] }
 0x155   :  { %621 = vmatmul.mubr.f32.gmra.mrb[2].mxu1 %v370_v27  ;;  %782 = vmatmul.mubr.f32.gmra.mrb[34].mxu0 %v370_v27  ;;  %v372_v39 = vmax.f32 %v286_v28, 0.0  ;;  %v1950_v27 = vpack.c.bf16 %v962_v21, %v960_v20  ;;  %v1952_v31 = vpack.c.bf16 %v967_v24, %v965_v23  ;;  %v980_v21 = vld [vmem:[#allocation8 + $0x160] sm:$0xff]  ;;  %v985_v24 = vld [vmem:[#allocation8 + $0x188] sm:$0xff] }
 0x156   :  { %v373_v36 = vmax.f32 %v288_v33, 0.0  ;;  %v291_v37 = vpop.f32.mrb[6].mxu0  ;;  %1931 = vmatpush1.bf16.msra.mxu1 %v1930_v26  ;;  %v966_v33 = vld [vmem:[#allocation8 + $0xf0] sm:$0xff] }
 0x157   :  { %v292_v40 = vadd.f32 %v291_v37, %v2521_v2  ;;  %v293_v41 = vpop.f32.mrb[7].mxu0  ;;  %1933 = vmatprep.subr.bf16.mxu1 %v1932_v30 }
 0x158   :  { %v294_v45 = vadd.f32 %v293_v41, %v2524_v3  ;;  %626 = vmatprep.mubr.f32.mxu1 %v373_v36  ;;  %787 = vmatprep.mubr.f32.mxu0 %v373_v36  ;;  %v971_v36 = vld [vmem:[#allocation8 + $0x118] sm:$0xff] }
 0x159   :  { %627 = vmatmul.mubr.f32.gmra.mrb[4].mxu1 %v372_v39  ;;  %788 = vmatmul.mubr.f32.gmra.mrb[36].mxu0 %v372_v39  ;;  %v374_v0 = vmax.f32 %v292_v40, 0.0  ;;  %v1954_v39 = vpack.c.bf16 %v966_v33, %v964_v32  ;;  %v1956_v43 = vpack.c.bf16 %v971_v36, %v969_v35  ;;  %v984_v33 = vld [vmem:[#allocation8 + $0x180] sm:$0xff]  ;;  %v989_v36 = vld [vmem:[#allocation8 + $0x1a8] sm:$0xff] }
 0x15a   :  { %v375_v48 = vmax.f32 %v294_v45, 0.0  ;;  %v297_v49 = vpop.f32.mrb[8].mxu0  ;;  %1935 = vmatpush1.bf16.msra.mxu1 %v1934_v38  ;;  %v970_v45 = vld [vmem:[#allocation8 + $0x110] sm:$0xff] }
 0x15b   :  { %v298_v51 = vadd.f32 %v297_v49, %v2521_v2  ;;  %v299_v52 = vpop.f32.mrb[9].mxu0  ;;  %1937 = vmatprep.subr.bf16.mxu1 %v1936_v42 }
 0x15c   :  { %v300_v56 = vadd.f32 %v299_v52, %v2524_v3  ;;  %632 = vmatprep.mubr.f32.mxu1 %v375_v48  ;;  %793 = vmatprep.mubr.f32.mxu0 %v375_v48  ;;  %v975_v48 = vld [vmem:[#allocation8 + $0x138] sm:$0xff] }
 0x15d   :  { %633 = vmatmul.mubr.f32.gmra.mrb[6].mxu1 %v374_v0  ;;  %794 = vmatmul.mubr.f32.gmra.mrb[38].mxu0 %v374_v0  ;;  %v376_v4 = vmax.f32 %v298_v51, 0.0  ;;  %v1958_v0 = vpack.c.bf16 %v970_v45, %v968_v44  ;;  %v1960_v54 = vpack.c.bf16 %v975_v48, %v973_v47  ;;  %v988_v45 = vld [vmem:[#allocation8 + $0x1a0] sm:$0xff]  ;;  %v993_v48 = vld [vmem:[#allocation8 + $0x1c8] sm:$0xff] }
 0x15e   :  { %v377_v59 = vmax.f32 %v300_v56, 0.0  ;;  %v303_v60 = vpop.f32.mrb[10].mxu0  ;;  %1939 = vmatpush1.bf16.msra.mxu1 %v1938_v50  ;;  %v974_v56 = vld [vmem:[#allocation8 + $0x130] sm:$0xff] }
 0x15f   :  { %v304_v5 = vadd.f32 %v303_v60, %v2521_v2  ;;  %v305_v6 = vpop.f32.mrb[11].mxu0  ;;  %1941 = vmatprep.subr.bf16.mxu1 %v1940_v53 }
 0x160   :  { %v306_v10 = vadd.f32 %v305_v6, %v2524_v3  ;;  %638 = vmatprep.mubr.f32.mxu1 %v377_v59  ;;  %799 = vmatprep.mubr.f32.mxu0 %v377_v59  ;;  %v979_v59 = vld [vmem:[#allocation8 + $0x158] sm:$0xff] }
 0x161   :  { %639 = vmatmul.mubr.f32.gmra.mrb[8].mxu1 %v376_v4  ;;  %800 = vmatmul.mubr.f32.gmra.mrb[40].mxu0 %v376_v4  ;;  %v378_v16 = vmax.f32 %v304_v5, 0.0  ;;  %v1962_v4 = vpack.c.bf16 %v974_v56, %v972_v55  ;;  %v1964_v8 = vpack.c.bf16 %v979_v59, %v977_v58  ;;  %v992_v56 = vld [vmem:[#allocation8 + $0x1c0] sm:$0xff] }
 0x162   :  { %v379_v13 = vmax.f32 %v306_v10, 0.0  ;;  %v309_v14 = vpop.f32.mrb[12].mxu0  ;;  %1943 = vmatpush1.bf16.msra.mxu1 %v1942_v63  ;;  %v978_v10 = vld [vmem:[#allocation8 + $0x150] sm:$0xff] }
 0x163   :  { %v310_v17 = vadd.f32 %v309_v14, %v2521_v2  ;;  %v311_v18 = vpop.f32.mrb[13].mxu0  ;;  %1945 = vmatprep.subr.bf16.mxu1 %v1944_v7 }
 0x164   :  { %v312_v22 = vadd.f32 %v311_v18, %v2524_v3  ;;  %644 = vmatprep.mubr.f32.mxu1 %v379_v13  ;;  %805 = vmatprep.mubr.f32.mxu0 %v379_v13  ;;  %v983_v13 = vld [vmem:[#allocation8 + $0x178] sm:$0xff] }
 0x165   :  { %645 = vmatmul.mubr.f32.gmra.mrb[10].mxu1 %v378_v16  ;;  %806 = vmatmul.mubr.f32.gmra.mrb[42].mxu0 %v378_v16  ;;  %v380_v28 = vmax.f32 %v310_v17, 0.0  ;;  %v1966_v16 = vpack.c.bf16 %v978_v10, %v976_v9  ;;  %v1968_v20 = vpack.c.bf16 %v983_v13, %v981_v12  ;;  %v997_v10 = vld [vmem:[#allocation8 + $0x1e8] sm:$0xff]  ;;  %v996_v13 = vld [vmem:[#allocation8 + $0x1e0] sm:$0xff] }
 0x166   :  { %v381_v25 = vmax.f32 %v312_v22, 0.0  ;;  %v315_v26 = vpop.f32.mrb[14].mxu0  ;;  %1947 = vmatpush1.bf16.msra.mxu1 %v1946_v15  ;;  %v982_v22 = vld [vmem:[#allocation8 + $0x170] sm:$0xff] }
 0x167   :  { %v316_v29 = vadd.f32 %v315_v26, %v2521_v2  ;;  %v317_v30 = vpop.f32.mrb[15].mxu0  ;;  %1949 = vmatprep.subr.bf16.mxu1 %v1948_v19 }
 0x168   :  { %v318_v34 = vadd.f32 %v317_v30, %v2524_v3  ;;  %650 = vmatprep.mubr.f32.mxu1 %v381_v25  ;;  %811 = vmatprep.mubr.f32.mxu0 %v381_v25  ;;  %v987_v25 = vld [vmem:[#allocation8 + $0x198] sm:$0xff] }
 0x169   :  { %651 = vmatmul.mubr.f32.gmra.mrb[12].mxu1 %v380_v28  ;;  %812 = vmatmul.mubr.f32.gmra.mrb[44].mxu0 %v380_v28  ;;  %v382_v40 = vmax.f32 %v316_v29, 0.0  ;;  %v1970_v28 = vpack.c.bf16 %v982_v22, %v980_v21  ;;  %v1972_v32 = vpack.c.bf16 %v987_v25, %v985_v24  ;;  %v1000_v25 = vld [vmem:[#allocation8 + $0x200] sm:$0xff] }
 0x16a   :  { %v383_v37 = vmax.f32 %v318_v34, 0.0  ;;  %v321_v38 = vpop.f32.mrb[16].mxu0  ;;  %1951 = vmatpush1.bf16.msra.mxu1 %v1950_v27  ;;  %v986_v34 = vld [vmem:[#allocation8 + $0x190] sm:$0xff] }
 0x16b   :  { %v322_v41 = vadd.f32 %v321_v38, %v2521_v2  ;;  %v323_v42 = vpop.f32.mrb[17].mxu0  ;;  %1953 = vmatprep.subr.bf16.mxu1 %v1952_v31 }
 0x16c   :  { %v324_v46 = vadd.f32 %v323_v42, %v2524_v3  ;;  %656 = vmatprep.mubr.f32.mxu1 %v383_v37  ;;  %817 = vmatprep.mubr.f32.mxu0 %v383_v37  ;;  %v991_v37 = vld [vmem:[#allocation8 + $0x1b8] sm:$0xff] }
 0x16d   :  { %657 = vmatmul.mubr.f32.gmra.mrb[14].mxu1 %v382_v40  ;;  %818 = vmatmul.mubr.f32.gmra.mrb[46].mxu0 %v382_v40  ;;  %v384_v51 = vmax.f32 %v322_v41, 0.0  ;;  %v1974_v40 = vpack.c.bf16 %v986_v34, %v984_v33  ;;  %v1976_v44 = vpack.c.bf16 %v991_v37, %v989_v36  ;;  %v1447_v33 = vld [vmem:[%s2896_s7 + $0x88] sm:$0xff]  ;;  %v1430_v34 = vld [vmem:[%s2896_s7] sm:$0xff] }
 0x16e   :  { %v385_v49 = vmax.f32 %v324_v46, 0.0  ;;  %v327_v50 = vpop.f32.mrb[18].mxu0  ;;  %1955 = vmatpush1.bf16.msra.mxu1 %v1954_v39  ;;  %v990_v46 = vld [vmem:[#allocation8 + $0x1b0] sm:$0xff] }
 0x16f   :  { %v328_v52 = vadd.f32 %v327_v50, %v2521_v2  ;;  %v329_v53 = vpop.f32.mrb[19].mxu0  ;;  %1957 = vmatprep.subr.bf16.mxu1 %v1956_v43 }
 0x170   :  { %v330_v57 = vadd.f32 %v329_v53, %v2524_v3  ;;  %662 = vmatprep.mubr.f32.mxu1 %v385_v49  ;;  %823 = vmatprep.mubr.f32.mxu0 %v385_v49  ;;  %v995_v49 = vld [vmem:[#allocation8 + $0x1d8] sm:$0xff] }
 0x171   :  { %663 = vmatmul.mubr.f32.gmra.mrb[16].mxu1 %v384_v51  ;;  %824 = vmatmul.mubr.f32.gmra.mrb[48].mxu0 %v384_v51  ;;  %v386_v5 = vmax.f32 %v328_v52, 0.0  ;;  %v1978_v51 = vpack.c.bf16 %v990_v46, %v988_v45  ;;  %v1980_v55 = vpack.c.bf16 %v995_v49, %v993_v48  ;;  %v1449_v49 = vld [vmem:[%s2896_s7 + $0x98] sm:$0xff] }
 0x172   :  { %v387_v60 = vmax.f32 %v330_v57, 0.0  ;;  %v333_v63 = vpop.f32.mrb[20].mxu0  ;;  %1959 = vmatpush1.bf16.msra.mxu1 %v1958_v0  ;;  %v994_v57 = vld [vmem:[#allocation8 + $0x1d0] sm:$0xff] }
 0x173   :  { %v334_v6 = vadd.f32 %v333_v63, %v2521_v2  ;;  %v335_v7 = vpop.f32.mrb[21].mxu0  ;;  %1961 = vmatprep.subr.bf16.mxu1 %v1960_v54  ;;  %v1982_v63 = vpack.c.bf16 %v994_v57, %v992_v56 }
 0x174   :  { %v336_v11 = vadd.f32 %v335_v7, %v2524_v3  ;;  %668 = vmatprep.mubr.f32.mxu1 %v387_v60  ;;  %829 = vmatprep.mubr.f32.mxu0 %v387_v60 }
 0x175   :  { %669 = vmatmul.mubr.f32.gmra.mrb[18].mxu1 %v386_v5  ;;  %830 = vmatmul.mubr.f32.gmra.mrb[50].mxu0 %v386_v5  ;;  %v388_v17 = vmax.f32 %v334_v6, 0.0 }
 0x176   :  { %v389_v14 = vmax.f32 %v336_v11, 0.0  ;;  %v339_v15 = vpop.f32.mrb[22].mxu0  ;;  %1963 = vmatpush1.bf16.msra.mxu1 %v1962_v4  ;;  %v999_v11 = vld [vmem:[#allocation8 + $0x1f8] sm:$0xff] }
 0x177   :  { %v340_v18 = vadd.f32 %v339_v15, %v2521_v2  ;;  %v341_v19 = vpop.f32.mrb[23].mxu0  ;;  %1965 = vmatprep.subr.bf16.mxu1 %v1964_v8  ;;  %v1984_v12 = vpack.c.bf16 %v999_v11, %v997_v10  ;;  %v1003_v15 = vld [vmem:[#allocation8 + $0x218] sm:$0xff] }
 0x178   :  { %v342_v23 = vadd.f32 %v341_v19, %v2524_v3  ;;  %674 = vmatprep.mubr.f32.mxu1 %v389_v14  ;;  %835 = vmatprep.mubr.f32.mxu0 %v389_v14 }
 0x179   :  { %675 = vmatmul.mubr.f32.gmra.mrb[20].mxu1 %v388_v17  ;;  %836 = vmatmul.mubr.f32.gmra.mrb[52].mxu0 %v388_v17  ;;  %v390_v29 = vmax.f32 %v340_v18, 0.0  ;;  %v2558_v17 = vld [vmem:[#allocation7] sm:$0xf] }
 0x17a   :  { %v391_v26 = vmax.f32 %v342_v23, 0.0  ;;  %v345_v27 = vpop.f32.mrb[24].mxu0  ;;  %1967 = vmatpush1.bf16.msra.mxu1 %v1966_v16  ;;  %v2562_v18 = vrot.slane %v2558_v17, %v2512_v62  ;;  %v2566_v19 = vrot.slane %v2558_v17, %v2518_v1 }
 0x17b   :  { %v346_v30 = vadd.f32 %v345_v27, %v2521_v2  ;;  %v347_v31 = vpop.f32.mrb[25].mxu0  ;;  %1969 = vmatprep.subr.bf16.mxu1 %v1968_v20 }
 0x17c   :  { %v348_v35 = vadd.f32 %v347_v31, %v2524_v3  ;;  %680 = vmatprep.mubr.f32.mxu1 %v391_v26  ;;  %841 = vmatprep.mubr.f32.mxu0 %v391_v26  ;;  %v1002_v26 = vld [vmem:[#allocation8 + $0x210] sm:$0xff] }
 0x17d   :  { %681 = vmatmul.mubr.f32.gmra.mrb[22].mxu1 %v390_v29  ;;  %842 = vmatmul.mubr.f32.gmra.mrb[54].mxu0 %v390_v29  ;;  %v392_v41 = vmax.f32 %v346_v30, 0.0  ;;  %v1007_v29 = vld [vmem:[#allocation8 + $0x238] sm:$0xff]  ;;  %v1004_v30 = vld [vmem:[#allocation8 + $0x220] sm:$0xff]  ;;  %v1006_v31 = vld [vmem:[#allocation8 + $0x230] sm:$0xff] }
 0x17e   :  { %v393_v38 = vmax.f32 %v348_v35, 0.0  ;;  %v351_v39 = vpop.f32.mrb[26].mxu0  ;;  %1971 = vmatpush1.bf16.msra.mxu1 %v1970_v28  ;;  %v1005_v28 = vld [vmem:[#allocation8 + $0x228] sm:$0xff] }
 0x17f   :  { %v352_v42 = vadd.f32 %v351_v39, %v2521_v2  ;;  %v353_v43 = vpop.f32.mrb[27].mxu0  ;;  %1973 = vmatprep.subr.bf16.mxu1 %v1972_v32  ;;  %v1446_v32 = vld [vmem:[%s2896_s7 + $0x80] sm:$0xff] }
 0x180   :  { %v354_v47 = vadd.f32 %v353_v43, %v2524_v3  ;;  %686 = vmatprep.mubr.f32.mxu1 %v393_v38  ;;  %847 = vmatprep.mubr.f32.mxu0 %v393_v38  ;;  %v1990_v38 = vpack.c.bf16 %v1002_v26, %v1000_v25  ;;  %v2585_v39 = vld [vmem:[#allocation8 + $0x248] sm:$0xff]  ;;  %v1012_v26 = vld [vmem:[#allocation8 + $0x260] sm:$0xff] }
 0x181   :  { %687 = vmatmul.mubr.f32.gmra.mrb[24].mxu1 %v392_v41  ;;  %848 = vmatmul.mubr.f32.gmra.mrb[56].mxu0 %v392_v41  ;;  %v394_v52 = vmax.f32 %v352_v42, 0.0  ;;  %v1431_v41 = vld [vmem:[%s2896_s7 + $0x8] sm:$0xff]  ;;  %v1448_v42 = vld [vmem:[%s2896_s7 + $0x90] sm:$0xff] }
 0x182   :  { %v395_v50 = vmax.f32 %v354_v47, 0.0  ;;  %v357_v0 = vpop.f32.mrb[28].mxu0  ;;  %1975 = vmatpush1.bf16.msra.mxu1 %v1974_v40  ;;  %v2052_v40 = vpack.c.bf16 %v1447_v33, %v1446_v32  ;;  %v1992_v47 = vpack.c.bf16 %v1007_v29, %v1005_v28  ;;  %v2054_v48 = vpack.c.bf16 %v1431_v41, %v1430_v34  ;;  %v1436_v28 = vld [vmem:[%s2896_s7 + $0x30] sm:$0xff]  ;;  %v1437_v29 = vld [vmem:[%s2896_s7 + $0x38] sm:$0xff] }
 0x183   :  { %v358_v53 = vadd.f32 %v357_v0, %v2521_v2  ;;  %v359_v54 = vpop.f32.mrb[29].mxu0  ;;  %1977 = vmatprep.subr.bf16.mxu1 %v1976_v44  ;;  %v1433_v0 = vld [vmem:[%s2896_s7 + $0x18] sm:$0xff]  ;;  %v1019_v41 = vld [vmem:[#allocation8 + $0x298] sm:$0xff] }
 0x184   :  { %v360_v58 = vadd.f32 %v359_v54, %v2524_v3  ;;  %692 = vmatprep.mubr.f32.mxu1 %v395_v50  ;;  %853 = vmatprep.mubr.f32.mxu0 %v395_v50  ;;  %v1432_v50 = vld [vmem:[%s2896_s7 + $0x10] sm:$0xff]  ;;  %v1450_v54 = vld [vmem:[%s2896_s7 + $0xa0] sm:$0xff] }
 0x185   :  { %693 = vmatmul.mubr.f32.gmra.mrb[26].mxu1 %v394_v52  ;;  %854 = vmatmul.mubr.f32.gmra.mrb[58].mxu0 %v394_v52  ;;  %v396_v4 = vmax.f32 %v358_v53, 0.0  ;;  %v1011_v52 = vld [vmem:[#allocation8 + $0x258] sm:$0xff]  ;;  %v2056_v53 = vpack.c.bf16 %v1449_v49, %v1448_v42  ;;  %v2058_v56 = vpack.c.bf16 %v1433_v0, %v1432_v50  ;;  %v2066_v42 = vpack.c.bf16 %v1437_v29, %v1436_v28  ;;  %v1438_v50 = vld [vmem:[%s2896_s7 + $0x40] sm:$0xff] }
 0x186   :  { %v397_v59 = vmax.f32 %v360_v58, 0.0  ;;  %v363_v60 = vpop.f32.mrb[30].mxu0  ;;  %1979 = vmatpush1.bf16.msra.mxu1 %v1978_v51  ;;  %2053 = vmatprep.subr.bf16.mxu0 %v2052_v40  ;;  %v1996_v11 = vpack.c.bf16 %v1011_v52, %v2585_v39  ;;  %v1017_v40 = vld [vmem:[#allocation8 + $0x288] sm:$0xff]  ;;  %v1439_v0 = vld [vmem:[%s2896_s7 + $0x48] sm:$0xff] }
 0x187   :  { %v364_v5 = vadd.f32 %v363_v60, %v2521_v2  ;;  %v365_v6 = vpop.f32.mrb[31].mxu0  ;;  %1981 = vmatprep.subr.bf16.mxu1 %v1980_v55  ;;  %v998_v2 = vld [vmem:[#allocation8 + $0x1f0] sm:$0xff]  ;;  %2055 = vmatpush3.bf16.msra.mxu0 %v2054_v48  ;;  %v1994_v60 = vpack.c.bf16 %v1006_v31, %v1004_v30  ;;  %v1016_v48 = vld [vmem:[#allocation8 + $0x280] sm:$0xff]  ;;  %v1025_v28 = vld [vmem:[#allocation8 + $0x2c8] sm:$0xff] }
 0x188   :  { %v366_v7 = vadd.f32 %v365_v6, %v2524_v3  ;;  %698 = vmatprep.mubr.f32.mxu1 %v397_v59  ;;  %859 = vmatprep.mubr.f32.mxu0 %v397_v59  ;;  %v1986_v14 = vpack.c.bf16 %v998_v2, %v996_v13  ;;  %v1001_v3 = vld [vmem:[#allocation8 + $0x208] sm:$0xff]  ;;  %v1451_v55 = vld [vmem:[%s2896_s7 + $0xa8] sm:$0xff]  ;;  %v1452_v13 = vld [vmem:[%s2896_s7 + $0xb0] sm:$0xff] }
 0x189   :  { %699 = vmatmul.mubr.f32.gmra.mrb[28].mxu1 %v396_v4  ;;  %860 = vmatmul.mubr.f32.gmra.mrb[60].mxu0 %v396_v4  ;;  %v398_v9 = vmax.f32 %v364_v5, 0.0  ;;  %v1988_v16 = vpack.c.bf16 %v1003_v15, %v1001_v3  ;;  %v2060_v4 = vpack.c.bf16 %v1451_v55, %v1450_v54  ;;  %v1434_v5 = vld [vmem:[%s2896_s7 + $0x20] sm:$0xff]  ;;  %v1435_v6 = vld [vmem:[%s2896_s7 + $0x28] sm:$0xff]  ;;  %v1453_v2 = vld [vmem:[%s2896_s7 + $0xb8] sm:$0xff]  ;;  %v2004_v55 = vpack.c.bf16 %v1019_v41, %v1017_v40 }
 0x18a   :  { %v399_v8 = vmax.f32 %v366_v7, 0.0  ;;  %1983 = vmatpush1.bf16.msra.mxu1 %v1982_v63  ;;  %v1008_v63 = vld [vmem:[#allocation8 + $0x240] sm:$0xff]  ;;  %2057 = vmatprep.subr.bf16.mxu0 %v2056_v53  ;;  %v1013_v3 = vld [vmem:[#allocation8 + $0x268] sm:$0xff]  ;;  %v1015_v15 = vld [vmem:[#allocation8 + $0x278] sm:$0xff] }
 0x18b   :  { %1985 = vmatprep.subr.bf16.mxu1 %v1984_v12  ;;  %v1010_v12 = vld [vmem:[#allocation8 + $0x250] sm:$0xff]  ;;  %2059 = vmatpush3.bf16.msra.mxu0 %v2058_v56  ;;  %v2000_v34 = vpack.c.bf16 %v1015_v15, %v1013_v3  ;;  %v1027_v29 = vld [vmem:[#allocation8 + $0x2d8] sm:$0xff] }
 0x18c   :  { %704 = vmatprep.mubr.f32.mxu1 %v399_v8  ;;  %865 = vmatprep.mubr.f32.mxu0 %v399_v8  ;;  %v1998_v25 = vpack.c.bf16 %v1010_v12, %v1008_v63  ;;  %v1018_v56 = vld [vmem:[#allocation8 + $0x290] sm:$0xff]  ;;  %v1021_v63 = vld [vmem:[#allocation8 + $0x2a8] sm:$0xff] }
 0x18d   :  { %705 = vmatmul.mubr.f32.gmra.mrb[30].mxu1 %v398_v9  ;;  %866 = vmatmul.mubr.f32.gmra.mrb[62].mxu0 %v398_v9  ;;  %v1443_v40 = vld [vmem:[%s2896_s7 + $0x68] sm:$0xff] }
 0x18e   :  { %1987 = vmatpush1.bf16.msra.mxu1 %v1986_v14  ;;  %2061 = vmatprep.subr.bf16.mxu0 %v2060_v4  ;;  %v1023_v4 = vld [vmem:[#allocation8 + $0x2b8] sm:$0xff] }
 0x18f   :  { %1989 = vmatprep.subr.bf16.mxu1 %v1988_v16  ;;  %v2062_v16 = vpack.c.bf16 %v1435_v6, %v1434_v5  ;;  %v2070_v5 = vpack.c.bf16 %v1439_v0, %v1438_v50  ;;  %v1461_v50 = vld [vmem:[%s2896_s7 + $0xf8] sm:$0xff] }
 0x191   :  { %2063 = vmatpush3.bf16.msra.mxu0 %v2062_v16 }
 0x224   :  { %v616_v20 = vpop.f32.mrb[0].mxu1  ;;  %v2568_v21 = vpop.f32.mrb[32].mxu0 }
 0x225   :  { %v617_v22 = vadd.f32 %v616_v20, %v2562_v18  ;;  %v618_v23 = vpop.f32.mrb[1].mxu1  ;;  %v2571_v24 = vpop.f32.mrb[33].mxu0 }
 0x226   :  { %v619_v27 = vadd.f32 %v618_v23, %v2566_v19 }
 0x227   :  { %v872_v43 = vmax.f32 %v617_v22, 0.0 }
 0x228   :  { %v873_v35 = vmax.f32 %v619_v27, 0.0  ;;  %v622_v36 = vpop.f32.mrb[2].mxu1  ;;  %v2583_v37 = vpop.f32.mrb[34].mxu0  ;;  %v2064_v27 = vpack.c.bf16 %v1453_v2, %v1452_v13  ;;  %v1440_v13 = vld [vmem:[%s2896_s7 + $0x50] sm:$0xff]  ;;  %v1441_v2 = vld [vmem:[%s2896_s7 + $0x58] sm:$0xff] }
 0x229   :  { %v623_v44 = vadd.f32 %v622_v36, %v2562_v18  ;;  %v624_v45 = vpop.f32.mrb[3].mxu1  ;;  %v2594_v46 = vpop.f32.mrb[35].mxu0  ;;  %v1454_v36 = vld [vmem:[%s2896_s7 + $0xc0] sm:$0xff] }
 0x22a   :  { %v625_v51 = vadd.f32 %v624_v45, %v2566_v19  ;;  %1140 = vmatprep.mubr.f32.mxu1 %v873_v35  ;;  %v1014_v35 = vld [vmem:[#allocation8 + $0x270] sm:$0xff]  ;;  %2065 = vmatprep.subr.bf16.mxu0 %v2064_v27 }
 0x22b   :  { %1141 = vmatmul.mubr.f32.vlgmr.msra.gmra.mrb[32].mxu1 %v872_v43  ;;  %v876_v7 = vmax.f32 %v623_v44, 0.0  ;;  %2067 = vmatpush3.bf16.msra.mxu0 %v2066_v42 }
 0x22c   :  { %v877_v57 = vmax.f32 %v625_v51, 0.0  ;;  %1991 = vmatpush1.bf16.msra.mxu1 %v1990_v38  ;;  %v628_v58 = vpop.f32.mrb[4].mxu1  ;;  %v2612_v59 = vpop.f32.mrb[36].mxu0  ;;  %v1455_v38 = vld [vmem:[%s2896_s7 + $0xc8] sm:$0xff] }
 0x22d   :  { %v629_v8 = vadd.f32 %v628_v58, %v2562_v18  ;;  %v630_v9 = vpop.f32.mrb[5].mxu1  ;;  %v2621_v10 = vpop.f32.mrb[37].mxu0  ;;  %1993 = vmatprep.subr.bf16.mxu1 %v1992_v47  ;;  %v2002_v47 = vpack.c.bf16 %v1014_v35, %v1012_v26  ;;  %v2068_v49 = vpack.c.bf16 %v1455_v38, %v1454_v36  ;;  %v1457_v58 = vld [vmem:[%s2896_s7 + $0xd8] sm:$0xff]  ;;  %v1459_v26 = vld [vmem:[%s2896_s7 + $0xe8] sm:$0xff] }
 0x22e   :  { %v631_v14 = vadd.f32 %v630_v9, %v2566_v19  ;;  %1146 = vmatprep.mubr.f32.mxu1 %v877_v57  ;;  %v1456_v57 = vld [vmem:[%s2896_s7 + $0xd0] sm:$0xff]  ;;  %v2006_v9 = vpack.c.bf16 %v1018_v56, %v1016_v48  ;;  %v1026_v48 = vld [vmem:[#allocation8 + $0x2d0] sm:$0xff] }
 0x22f   :  { %1147 = vmatmul.mubr.f32.gmra.mrb[34].mxu1 %v876_v7  ;;  %v880_v30 = vmax.f32 %v629_v8, 0.0  ;;  %2069 = vmatprep.subr.bf16.mxu0 %v2068_v49  ;;  %v2072_v12 = vpack.c.bf16 %v1457_v58, %v1456_v57  ;;  %v1024_v36 = vld [vmem:[#allocation8 + $0x2c0] sm:$0xff] }
 0x230   :  { %v881_v20 = vmax.f32 %v631_v14, 0.0  ;;  %1995 = vmatpush1.bf16.msra.mxu1 %v1994_v60  ;;  %v634_v22 = vpop.f32.mrb[6].mxu1  ;;  %v2631_v23 = vpop.f32.mrb[38].mxu0  ;;  %2071 = vmatpush3.bf16.msra.mxu0 %v2070_v5  ;;  %v1460_v49 = vld [vmem:[%s2896_s7 + $0xf0] sm:$0xff]  ;;  %v2014_v58 = vpack.c.bf16 %v1026_v48, %v1024_v36 }
 0x231   :  { %v635_v31 = vadd.f32 %v634_v22, %v2562_v18  ;;  %v636_v32 = vpop.f32.mrb[7].mxu1  ;;  %v2640_v33 = vpop.f32.mrb[39].mxu0  ;;  %1997 = vmatprep.subr.bf16.mxu1 %v1996_v11  ;;  %v1020_v11 = vld [vmem:[#allocation8 + $0x2a0] sm:$0xff]  ;;  %v1022_v22 = vld [vmem:[#allocation8 + $0x2b0] sm:$0xff]  ;;  %2073 = vmatprep.subr.bf16.mxu0 %v2072_v12 }
 0x232   :  { %v637_v39 = vadd.f32 %v636_v32, %v2566_v19  ;;  %1152 = vmatprep.mubr.f32.mxu1 %v881_v20  ;;  %v2008_v20 = vpack.c.bf16 %v1023_v4, %v1021_v63  ;;  %v2010_v35 = vpack.c.bf16 %v1022_v22, %v1020_v11  ;;  %v1444_v63 = vld [vmem:[%s2896_s7 + $0x70] sm:$0xff]  ;;  %v1445_v4 = vld [vmem:[%s2896_s7 + $0x78] sm:$0xff] }
 0x233   :  { %1153 = vmatmul.mubr.f32.gmra.mrb[36].mxu1 %v880_v30  ;;  %v884_v51 = vmax.f32 %v635_v31, 0.0  ;;  %v2074_v30 = vpack.c.bf16 %v1441_v2, %v1440_v13  ;;  %v1028_v12 = vld [vmem:[#allocation8 + $0x2e0] sm:$0xff]  ;;  %v1030_v13 = vld [vmem:[#allocation8 + $0x2f0] sm:$0xff] }
 0x234   :  { %v885_v43 = vmax.f32 %v637_v39, 0.0  ;;  %1999 = vmatpush1.bf16.msra.mxu1 %v1998_v25  ;;  %v640_v44 = vpop.f32.mrb[8].mxu1  ;;  %v2649_v45 = vpop.f32.mrb[40].mxu0  ;;  %v1458_v25 = vld [vmem:[%s2896_s7 + $0xe0] sm:$0xff] }
 0x235   :  { %v641_v52 = vadd.f32 %v640_v44, %v2562_v18  ;;  %v642_v53 = vpop.f32.mrb[9].mxu1  ;;  %v2658_v54 = vpop.f32.mrb[41].mxu0  ;;  %2001 = vmatprep.subr.bf16.mxu1 %v2000_v34  ;;  %v2076_v38 = vpack.c.bf16 %v1459_v26, %v1458_v25  ;;  %v1442_v39 = vld [vmem:[%s2896_s7 + $0x60] sm:$0xff]  ;;  %2075 = vmatpush3.bf16.msra.mxu0 %v2074_v30  ;;  %v2018_v26 = vpack.c.bf16 %v1030_v13, %v1028_v12  ;;  %v1040_v13 = vld [vmem:[#allocation8 + $0x340] sm:$0xff] }
 0x236   :  { %v643_v60 = vadd.f32 %v642_v53, %v2566_v19  ;;  %1158 = vmatprep.mubr.f32.mxu1 %v885_v43  ;;  %v2078_v53 = vpack.c.bf16 %v1443_v40, %v1442_v39  ;;  %v1039_v39 = vld [vmem:[#allocation8 + $0x338] sm:$0xff] }
 0x237   :  { %1159 = vmatmul.mubr.f32.gmra.mrb[38].mxu1 %v884_v51  ;;  %v888_v14 = vmax.f32 %v641_v52, 0.0  ;;  %v1029_v51 = vld [vmem:[#allocation8 + $0x2e8] sm:$0xff]  ;;  %v1031_v52 = vld [vmem:[#allocation8 + $0x2f8] sm:$0xff]  ;;  %2077 = vmatprep.subr.bf16.mxu0 %v2076_v38 }
 0x238   :  { %v889_v6 = vmax.f32 %v643_v60, 0.0  ;;  %2003 = vmatpush1.bf16.msra.mxu1 %v2002_v47  ;;  %v646_v7 = vpop.f32.mrb[10].mxu1  ;;  %v2667_v8 = vpop.f32.mrb[42].mxu0  ;;  %v2012_v47 = vpack.c.bf16 %v1027_v29, %v1025_v28  ;;  %v2080_v60 = vpack.c.bf16 %v1461_v50, %v1460_v49  ;;  %v2016_v11 = vpack.c.bf16 %v1031_v52, %v1029_v51  ;;  %v1037_v38 = vld [vmem:[#allocation8 + $0x328] sm:$0xff]  ;;  %v1036_v51 = vld [vmem:[#allocation8 + $0x320] sm:$0xff]  ;;  %v1038_v52 = vld [vmem:[#allocation8 + $0x330] sm:$0xff] }
 0x239   :  { %v647_v3 = vadd.f32 %v646_v7, %v2562_v18  ;;  %v648_v15 = vpop.f32.mrb[11].mxu1  ;;  %v2676_v16 = vpop.f32.mrb[43].mxu0  ;;  %2005 = vmatprep.subr.bf16.mxu1 %v2004_v55  ;;  %2079 = vmatpush3.bf16.msra.mxu0 %v2078_v53 }
 0x23a   :  { %v649_v27 = vadd.f32 %v648_v15, %v2566_v19  ;;  %1164 = vmatprep.mubr.f32.mxu1 %v889_v6  ;;  %v2082_v15 = vpack.c.bf16 %v1445_v4, %v1444_v63  ;;  %2081 = vmatprep.subr.bf16.mxu0 %v2080_v60  ;;  %v2026_v4 = vpack.c.bf16 %v1038_v52, %v1036_v51 }
 0x23b   :  { %1165 = vmatmul.mubr.f32.gmra.mrb[40].mxu1 %v888_v14  ;;  %v892_v41 = vmax.f32 %v647_v3, 0.0  ;;  %v1033_v14 = vld [vmem:[#allocation8 + $0x308] sm:$0xff]  ;;  %v1035_v3 = vld [vmem:[#allocation8 + $0x318] sm:$0xff] }
 0x23c   :  { %v893_v31 = vmax.f32 %v649_v27, 0.0  ;;  %2007 = vmatpush1.bf16.msra.mxu1 %v2006_v9  ;;  %v652_v32 = vpop.f32.mrb[12].mxu1  ;;  %v2685_v34 = vpop.f32.mrb[44].mxu0 }
 0x23d   :  { %v653_v42 = vadd.f32 %v652_v32, %v2562_v18  ;;  %v654_v43 = vpop.f32.mrb[13].mxu1  ;;  %v2694_v44 = vpop.f32.mrb[45].mxu0  ;;  %2009 = vmatprep.subr.bf16.mxu1 %v2008_v20  ;;  %v1032_v32 = vld [vmem:[#allocation8 + $0x300] sm:$0xff]  ;;  %2083 = vmatpush3.bf16.msra.mxu0 %v2082_v15  ;;  %v1047_v15 = vld [vmem:[#allocation8 + $0x378] sm:$0xff] }
 0x23e   :  { %v655_v0 = vadd.f32 %v654_v43, %v2566_v19  ;;  %1170 = vmatprep.mubr.f32.mxu1 %v893_v31  ;;  %v2020_v31 = vpack.c.bf16 %v1035_v3, %v1033_v14  ;;  %v1045_v3 = vld [vmem:[#allocation8 + $0x368] sm:$0xff] }
 0x23f   :  { %1171 = vmatmul.mubr.f32.gmra.mrb[42].mxu1 %v892_v41  ;;  %v896_v5 = vmax.f32 %v653_v42, 0.0 }
 0x240   :  { %v897_v55 = vmax.f32 %v655_v0, 0.0  ;;  %2011 = vmatpush1.bf16.msra.mxu1 %v2010_v35  ;;  %v658_v56 = vpop.f32.mrb[14].mxu1  ;;  %v2703_v57 = vpop.f32.mrb[46].mxu0  ;;  %v1034_v35 = vld [vmem:[#allocation8 + $0x310] sm:$0xff]  ;;  %v2024_v0 = vpack.c.bf16 %v1039_v39, %v1037_v38 }
 0x241   :  { %v659_v6 = vadd.f32 %v658_v56, %v2562_v18  ;;  %v660_v7 = vpop.f32.mrb[15].mxu1  ;;  %v2712_v9 = vpop.f32.mrb[47].mxu0  ;;  %2013 = vmatprep.subr.bf16.mxu1 %v2012_v47  ;;  %v2022_v43 = vpack.c.bf16 %v1034_v35, %v1032_v32  ;;  %v1043_v56 = vld [vmem:[#allocation8 + $0x358] sm:$0xff]  ;;  %v2032_v35 = vpack.c.bf16 %v1047_v15, %v1045_v3  ;;  %v1046_v38 = vld [vmem:[#allocation8 + $0x370] sm:$0xff] }
 0x242   :  { %v661_v2 = vadd.f32 %v660_v7, %v2566_v19  ;;  %1176 = vmatprep.mubr.f32.mxu1 %v897_v55  ;;  %v1041_v55 = vld [vmem:[#allocation8 + $0x348] sm:$0xff] }
 0x243   :  { %1177 = vmatmul.mubr.f32.gmra.mrb[44].mxu1 %v896_v5  ;;  %v900_v27 = vmax.f32 %v659_v6, 0.0  ;;  %v2028_v12 = vpack.c.bf16 %v1043_v56, %v1041_v55  ;;  %v1048_v56 = vld [vmem:[#allocation8 + $0x380] sm:$0xff] }
 0x244   :  { %v901_v20 = vmax.f32 %v661_v2, 0.0  ;;  %2015 = vmatpush1.bf16.msra.mxu1 %v2014_v58  ;;  %v664_v22 = vpop.f32.mrb[16].mxu1  ;;  %v2715_v25 = vpop.f32.mrb[48].mxu0  ;;  %v1042_v2 = vld [vmem:[#allocation8 + $0x350] sm:$0xff] }
 0x245   :  { %v665_v28 = vadd.f32 %v664_v22, %v2562_v18  ;;  %v666_v29 = vpop.f32.mrb[17].mxu1  ;;  %v2718_v30 = vpop.f32.mrb[49].mxu0  ;;  %2017 = vmatprep.subr.bf16.mxu1 %v2016_v11 }
 0x246   :  { %v667_v36 = vadd.f32 %v666_v29, %v2566_v19  ;;  %1182 = vmatprep.mubr.f32.mxu1 %v901_v20 }
 0x247   :  { %1183 = vmatmul.mubr.f32.gmra.mrb[46].mxu1 %v900_v27  ;;  %v904_v47 = vmax.f32 %v665_v28, 0.0  ;;  %v2030_v27 = vpack.c.bf16 %v1042_v2, %v1040_v13 }
 0x248   :  { %v905_v40 = vmax.f32 %v667_v36, 0.0  ;;  %2019 = vmatpush1.bf16.msra.mxu1 %v2018_v26  ;;  %v670_v41 = vpop.f32.mrb[18].mxu1  ;;  %v2721_v42 = vpop.f32.mrb[50].mxu0  ;;  %v1044_v36 = vld [vmem:[#allocation8 + $0x360] sm:$0xff] }
 0x249   :  { %v671_v48 = vadd.f32 %v670_v41, %v2562_v18  ;;  %v672_v49 = vpop.f32.mrb[19].mxu1  ;;  %v2724_v50 = vpop.f32.mrb[51].mxu0  ;;  %2021 = vmatprep.subr.bf16.mxu1 %v2020_v31  ;;  %v1051_v41 = vld [vmem:[#allocation8 + $0x398] sm:$0xff] }
 0x24a   :  { %v673_v53 = vadd.f32 %v672_v49, %v2566_v19  ;;  %1188 = vmatprep.mubr.f32.mxu1 %v905_v40  ;;  %v1049_v40 = vld [vmem:[#allocation8 + $0x388] sm:$0xff]  ;;  %v2034_v49 = vpack.c.bf16 %v1046_v38, %v1044_v36 }
 0x24b   :  { %1189 = vmatmul.mubr.f32.gmra.mrb[48].mxu1 %v904_v47  ;;  %v908_v5 = vmax.f32 %v671_v48, 0.0  ;;  %v2036_v55 = vpack.c.bf16 %v1051_v41, %v1049_v40  ;;  %v540_v41 = vsub.s32 2, %v2509_v61 }
 0x24c   :  { %v909_v58 = vmax.f32 %v673_v53, 0.0  ;;  %2023 = vmatpush1.bf16.msra.mxu1 %v2022_v43  ;;  %v676_v60 = vpop.f32.mrb[20].mxu1  ;;  %v2727_v63 = vpop.f32.mrb[52].mxu0 }
 0x24d   :  { %v677_v6 = vadd.f32 %v676_v60, %v2562_v18  ;;  %v678_v7 = vpop.f32.mrb[21].mxu1  ;;  %v2730_v11 = vpop.f32.mrb[53].mxu0  ;;  %2025 = vmatprep.subr.bf16.mxu1 %v2024_v0 }
 0x24e   :  { %v679_v14 = vadd.f32 %v678_v7, %v2566_v19  ;;  %1194 = vmatprep.mubr.f32.mxu1 %v909_v58  ;;  %v1050_v58 = vld [vmem:[#allocation8 + $0x390] sm:$0xff] }
 0x24f   :  { %1195 = vmatmul.mubr.f32.gmra.mrb[50].mxu1 %v908_v5  ;;  %v912_v28 = vmax.f32 %v677_v6, 0.0  ;;  %v1055_v5 = vld [vmem:[#allocation8 + $0x3b8] sm:$0xff]  ;;  %v2038_v13 = vpack.c.bf16 %v1050_v58, %v1048_v56 }
 0x250   :  { %v913_v20 = vmax.f32 %v679_v14, 0.0  ;;  %2027 = vmatpush1.bf16.msra.mxu1 %v2026_v4  ;;  %v682_v22 = vpop.f32.mrb[22].mxu1  ;;  %v2733_v26 = vpop.f32.mrb[54].mxu0  ;;  %v1053_v4 = vld [vmem:[#allocation8 + $0x3a8] sm:$0xff] }
 0x251   :  { %v683_v29 = vadd.f32 %v682_v22, %v2562_v18  ;;  %v684_v31 = vpop.f32.mrb[23].mxu1  ;;  %v2736_v32 = vpop.f32.mrb[55].mxu0  ;;  %2029 = vmatprep.subr.bf16.mxu1 %v2028_v12  ;;  %v1052_v22 = vld [vmem:[#allocation8 + $0x3a0] sm:$0xff] }
 0x252   :  { %v685_v39 = vadd.f32 %v684_v31, %v2566_v19  ;;  %1200 = vmatprep.mubr.f32.mxu1 %v913_v20  ;;  %v2040_v20 = vpack.c.bf16 %v1055_v5, %v1053_v4  ;;  %v1057_v31 = vld [vmem:[#allocation8 + $0x3c8] sm:$0xff]  ;;  %v1063_v4 = vld [vmem:[#allocation8 + $0x3f8] sm:$0xff] }
 0x253   :  { %1201 = vmatmul.mubr.f32.gmra.mrb[52].mxu1 %v912_v28  ;;  %v916_v0 = vmax.f32 %v683_v29, 0.0  ;;  %v544_v28 = vsub.s32 3, %v2509_v61 }
 0x254   :  { %v917_v43 = vmax.f32 %v685_v39, 0.0  ;;  %2031 = vmatpush1.bf16.msra.mxu1 %v2030_v27  ;;  %v688_v47 = vpop.f32.mrb[24].mxu1  ;;  %v2739_v48 = vpop.f32.mrb[56].mxu0  ;;  %v1054_v27 = vld [vmem:[#allocation8 + $0x3b0] sm:$0xff] }
 0x255   :  { %v689_v51 = vadd.f32 %v688_v47, %v2562_v18  ;;  %v690_v52 = vpop.f32.mrb[25].mxu1  ;;  %v2742_v53 = vpop.f32.mrb[57].mxu0  ;;  %2033 = vmatprep.subr.bf16.mxu1 %v2032_v35  ;;  %v1059_v35 = vld [vmem:[#allocation8 + $0x3d8] sm:$0xff]  ;;  %v2042_v40 = vpack.c.bf16 %v1054_v27, %v1052_v22  ;;  %v2759_v56 = vrot.slane %v2558_v17, %v544_v28  ;;  %v1060_v27 = vld [vmem:[#allocation8 + $0x3e0] sm:$0xff]  ;;  %v1062_v28 = vld [vmem:[#allocation8 + $0x3f0] sm:$0xff] }
 0x256   :  { %v691_v60 = vadd.f32 %v690_v52, %v2566_v19  ;;  %1206 = vmatprep.mubr.f32.mxu1 %v917_v43  ;;  %v1056_v52 = vld [vmem:[#allocation8 + $0x3c0] sm:$0xff] }
 0x257   :  { %1207 = vmatmul.mubr.f32.gmra.mrb[54].mxu1 %v916_v0  ;;  %v920_v2 = vmax.f32 %v689_v51, 0.0  ;;  %v2044_v51 = vpack.c.bf16 %v1059_v35, %v1057_v31 }
 0x258   :  { %v921_v6 = vmax.f32 %v691_v60, 0.0  ;;  %2035 = vmatpush1.bf16.msra.mxu1 %v2034_v49  ;;  %v694_v7 = vpop.f32.mrb[26].mxu1  ;;  %v2745_v12 = vpop.f32.mrb[58].mxu0  ;;  %v1061_v60 = vld [vmem:[#allocation8 + $0x3e8] sm:$0xff] }
 0x259   :  { %v695_v14 = vadd.f32 %v694_v7, %v2562_v18  ;;  %v696_v3 = vpop.f32.mrb[27].mxu1  ;;  %v2748_v15 = vpop.f32.mrb[59].mxu0  ;;  %2037 = vmatprep.subr.bf16.mxu1 %v2036_v55  ;;  %v1058_v55 = vld [vmem:[#allocation8 + $0x3d0] sm:$0xff]  ;;  %v2048_v22 = vpack.c.bf16 %v1063_v4, %v1061_v60 }
 0x25a   :  { %v697_v29 = vadd.f32 %v696_v3, %v2566_v19  ;;  %1212 = vmatprep.mubr.f32.mxu1 %v921_v6  ;;  %v2046_v7 = vpack.c.bf16 %v1058_v55, %v1056_v52 }
 0x25b   :  { %1213 = vmatmul.mubr.f32.gmra.mrb[56].mxu1 %v920_v2  ;;  %v924_v43 = vmax.f32 %v695_v14, 0.0 }
 0x25c   :  { %v925_v36 = vmax.f32 %v697_v29, 0.0  ;;  %2039 = vmatpush1.bf16.msra.mxu1 %v2038_v13  ;;  %v700_v38 = vpop.f32.mrb[28].mxu1  ;;  %v2752_v39 = vpop.f32.mrb[60].mxu0  ;;  %v2765_v13 = vrot.slane %v2558_v17, %v540_v41  ;;  %v780_v29 = vadd.f32 %v2571_v24, %v2759_v56  ;;  %v2050_v17 = vpack.c.bf16 %v1062_v28, %v1060_v27 }
 0x25d   :  { %v701_v47 = vadd.f32 %v700_v38, %v2562_v18  ;;  %v702_v49 = vpop.f32.mrb[29].mxu1  ;;  %v2756_v0 = vpop.f32.mrb[61].mxu0  ;;  %2041 = vmatprep.subr.bf16.mxu1 %v2040_v20 }
 0x25e   :  { %v703_v58 = vadd.f32 %v702_v49, %v2566_v19  ;;  %1218 = vmatprep.mubr.f32.mxu1 %v925_v36  ;;  %v875_v38 = vmax.f32 %v780_v29, 0.0 }
 0x25f   :  { %1219 = vmatmul.mubr.f32.gmra.mrb[58].mxu1 %v924_v43  ;;  %v928_v2 = vmax.f32 %v701_v47, 0.0  ;;  %v792_v43 = vadd.f32 %v2621_v10, %v2759_v56  ;;  %v790_v47 = vadd.f32 %v2612_v59, %v2765_v13  ;;  %v804_v10 = vadd.f32 %v2658_v54, %v2759_v56 }
 0x260   :  { %v929_v61 = vmax.f32 %v703_v58, 0.0  ;;  %2043 = vmatpush1.bf16.msra.mxu1 %v2042_v40  ;;  %v706_v5 = vpop.f32.mrb[30].mxu1  ;;  %v2762_v6 = vpop.f32.mrb[62].mxu0  ;;  %v786_v40 = vadd.f32 %v2594_v46, %v2759_v56  ;;  %v798_v46 = vadd.f32 %v2640_v33, %v2759_v56  ;;  %v802_v59 = vadd.f32 %v2649_v45, %v2765_v13 }
 0x261   :  { %v707_v14 = vadd.f32 %v706_v5, %v2562_v18  ;;  %v708_v3 = vpop.f32.mrb[31].mxu1  ;;  %v2768_v20 = vpop.f32.mrb[63].mxu0  ;;  %2045 = vmatprep.subr.bf16.mxu1 %v2044_v51  ;;  %v778_v18 = vadd.f32 %v2568_v21, %v2765_v13  ;;  %v883_v49 = vmax.f32 %v792_v43, 0.0  ;;  %v882_v51 = vmax.f32 %v790_v47, 0.0  ;;  %v1607_v43 = vld [vmem:[%s2897_s8] sm:$0x1] }
 0x262   :  { %v709_v31 = vadd.f32 %v708_v3, %v2566_v19  ;;  %1224 = vmatprep.mubr.f32.mxu1 %v929_v61  ;;  %v784_v19 = vadd.f32 %v2583_v37, %v2765_v13  ;;  %v879_v41 = vmax.f32 %v786_v40, 0.0  ;;  %v796_v37 = vadd.f32 %v2631_v23, %v2765_v13  ;;  %s2316_s8 = smov [#allocation11]  }
 0x263   :  { %1225 = vmatmul.mubr.f32.gmra.mrb[60].mxu1 %v928_v2  ;;  %v932_v36 = vmax.f32 %v707_v14, 0.0  ;;  %v874_v24 = vmax.f32 %v778_v18, 0.0  ;;  %v887_v52 = vmax.f32 %v798_v46, 0.0  ;;  %v891_v58 = vmax.f32 %v804_v10, 0.0  ;;  %s1663_s10 = sshll.u32 %s2316_s8, 4  ;;  %s1664_s10 = int_to_ptr.vmem [resolvable:$true] %s1663_s10 }
 0x264   :  { %v933_v35 = vmax.f32 %v709_v31, 0.0  ;;  %2047 = vmatpush1.bf16.msra.mxu1 %v2046_v7  ;;  %v878_v21 = vmax.f32 %v784_v19, 0.0  ;;  %v886_v55 = vmax.f32 %v796_v37, 0.0  ;;  %v810_v33 = vadd.f32 %v2676_v16, %v2759_v56  ;;  %s2275_s14 = scalar_lea.vmem %s1664_s10, 16  ;;  %s2279_s18 = scalar_lea.vmem %s1664_s10, 32 }
 0x265   :  { %2049 = vmatprep.subr.bf16.mxu1 %v2048_v22  ;;  %v890_v60 = vmax.f32 %v802_v59, 0.0  ;;  %v808_v23 = vadd.f32 %v2667_v8, %v2765_v13  ;;  %v816_v54 = vadd.f32 %v2694_v44, %v2759_v56  ;;  %v814_v45 = vadd.f32 %v2685_v34, %v2765_v13  ;;  %p2276_p12 = scmp.ne.s32.totalorder %s1664_s10, %s2275_s14  ;;  %p2280_p13 = scmp.lt.s32.totalorder %s1664_s10, %s1664_s10 }
 0x266   :  { %1230 = vmatprep.mubr.f32.mxu1 %v933_v35  ;;  %v895_v4 = vmax.f32 %v810_v33, 0.0  ;;  %v822_v16 = vadd.f32 %v2712_v9, %v2759_v56  ;;  %v820_v8 = vadd.f32 %v2703_v57, %v2765_v13  ;;  %v828_v44 = vadd.f32 %v2718_v30, %v2759_v56  ;;  %p2281_p0 = scmp.lt.s32.totalorder %s2279_s18, %s2275_s14 }
 0x267   :  { %1231 = vmatmul.mubr.f32.gmra.mrb[62].mxu1 %v932_v36  ;;  %v894_v61 = vmax.f32 %v808_v23, 0.0  ;;  %v899_v5 = vmax.f32 %v816_v54, 0.0  ;;  %v898_v7 = vmax.f32 %v814_v45, 0.0  ;;  %v826_v34 = vadd.f32 %v2715_v25, %v2765_v13 }
 0x268   :  { %2051 = vmatpush1.bf16.msra.mxu1 %v2050_v17  ;;  %1301 = vmatprep.mubr.f32.mxu1 %v875_v38  ;;  %v903_v2 = vmax.f32 %v822_v16, 0.0  ;;  %v902_v14 = vmax.f32 %v820_v8, 0.0  ;;  %v907_v3 = vmax.f32 %v828_v44, 0.0  ;;  %v834_v9 = vadd.f32 %v2724_v50, %v2759_v56  ;;  %p2282_p1 = por %p2281_p0, %p2280_p13 }
 0x269   :  { %v906_v22 = vmax.f32 %v826_v34, 0.0  ;;  %v832_v57 = vadd.f32 %v2721_v42, %v2765_v13  ;;  %v840_v30 = vadd.f32 %v2730_v11, %v2759_v56  ;;  %v838_v25 = vadd.f32 %v2727_v63, %v2765_v13 }
 0x26a   :  { %v911_v27 = vmax.f32 %v834_v9, 0.0  ;;  %v846_v50 = vadd.f32 %v2736_v32, %v2759_v56  ;;  %v844_v42 = vadd.f32 %v2733_v26, %v2765_v13  ;;  %v852_v11 = vadd.f32 %v2742_v53, %v2759_v56  ;;  %p2283_p2 = pnand %p2282_p1, %p2276_p12 }
 0x26b   :  { %1302 = vmatmul.mubr.f32.vlgmr.msra.gmra.mrb[32].mxu1 %v874_v24  ;;  %v910_v28 = vmax.f32 %v832_v57, 0.0  ;;  %v915_v29 = vmax.f32 %v840_v30, 0.0  ;;  %v914_v31 = vmax.f32 %v838_v25, 0.0  ;;  %v850_v63 = vadd.f32 %v2739_v48, %v2765_v13 }
 0x26c   :  { %1307 = vmatprep.mubr.f32.mxu1 %v879_v41  ;;  %v919_v35 = vmax.f32 %v846_v50, 0.0  ;;  %v918_v17 = vmax.f32 %v844_v42, 0.0  ;;  %v923_v18 = vmax.f32 %v852_v11, 0.0  ;;  %v858_v32 = vadd.f32 %v2748_v15, %v2759_v56 }
 0x26d   :  { %v922_v36 = vmax.f32 %v850_v63, 0.0  ;;  %v856_v26 = vadd.f32 %v2745_v12, %v2765_v13  ;;  %v864_v53 = vadd.f32 %v2756_v0, %v2759_v56  ;;  %v862_v48 = vadd.f32 %v2752_v39, %v2765_v13 }
 0x26e   :  { %v927_v38 = vmax.f32 %v858_v32, 0.0  ;;  %v870_v15 = vadd.f32 %v2768_v20, %v2759_v56  ;;  %v868_v12 = vadd.f32 %v2762_v6, %v2765_v13  ;;  %v2315_v39 = vmov 0  }
 0x26f   :  { %1308 = vmatmul.mubr.f32.gmra.mrb[34].mxu1 %v878_v21  ;;  %v926_v40 = vmax.f32 %v856_v26, 0.0  ;;  %v931_v24 = vmax.f32 %v864_v53, 0.0  ;;  %v930_v19 = vmax.f32 %v862_v48, 0.0  ;;  %2160 = vset.pattern.permute.xlu0 %v2315_v39  ;;  %v1064_v21 = vld [vmem:[#allocation10] sm:$0x3] }
 0x270   :  { %1313 = vmatprep.mubr.f32.mxu1 %v883_v49  ;;  %v935_v41 = vmax.f32 %v870_v15, 0.0  ;;  %v934_v0 = vmax.f32 %v868_v12, 0.0  ;;  %1642 = vperm.xlu0 %2160, %v1607_v43   ;;  %v2839_v56 = vrot.slane %v1064_v21, %v2512_v62  ;;  %v2842_v20 = vrot.slane %v1064_v21, %v2518_v1 }
 0x273   :  { %1314 = vmatmul.mubr.f32.gmra.mrb[36].mxu1 %v882_v51 }
 0x274   :  { %1319 = vmatprep.mubr.f32.mxu1 %v887_v52 }
 0x277   :  { %1320 = vmatmul.mubr.f32.gmra.mrb[38].mxu1 %v886_v55 }
 0x278   :  { %1325 = vmatprep.mubr.f32.mxu1 %v891_v58 }
 0x27b   :  { %1326 = vmatmul.mubr.f32.gmra.mrb[40].mxu1 %v890_v60 }
 0x27c   :  { %1331 = vmatprep.mubr.f32.mxu1 %v895_v4 }
 0x27f   :  { %1332 = vmatmul.mubr.f32.gmra.mrb[42].mxu1 %v894_v61 }
 0x280   :  { %1337 = vmatprep.mubr.f32.mxu1 %v899_v5 }
 0x283   :  { %1338 = vmatmul.mubr.f32.gmra.mrb[44].mxu1 %v898_v7 }
 0x284   :  { %1343 = vmatprep.mubr.f32.mxu1 %v903_v2 }
 0x287   :  { %1344 = vmatmul.mubr.f32.gmra.mrb[46].mxu1 %v902_v14 }
 0x288   :  { %1349 = vmatprep.mubr.f32.mxu1 %v907_v3 }
 0x28b   :  { %1350 = vmatmul.mubr.f32.gmra.mrb[48].mxu1 %v906_v22 }
 0x28c   :  { %1355 = vmatprep.mubr.f32.mxu1 %v911_v27 }
 0x28f   :  { %1356 = vmatmul.mubr.f32.gmra.mrb[50].mxu1 %v910_v28 }
 0x290   :  { %1361 = vmatprep.mubr.f32.mxu1 %v915_v29 }
 0x293   :  { %1362 = vmatmul.mubr.f32.gmra.mrb[52].mxu1 %v914_v31 }
 0x294   :  { %1367 = vmatprep.mubr.f32.mxu1 %v919_v35 }
 0x297   :  { %1368 = vmatmul.mubr.f32.gmra.mrb[54].mxu1 %v918_v17 }
 0x298   :  { %1373 = vmatprep.mubr.f32.mxu1 %v923_v18 }
 0x29b   :  { %1374 = vmatmul.mubr.f32.gmra.mrb[56].mxu1 %v922_v36 }
 0x29c   :  { %1379 = vmatprep.mubr.f32.mxu1 %v927_v38 }
 0x29f   :  { %1380 = vmatmul.mubr.f32.gmra.mrb[58].mxu1 %v926_v40 }
 0x2a0   :  { %1385 = vmatprep.mubr.f32.mxu1 %v931_v24 }
 0x2a3   :  { %1386 = vmatmul.mubr.f32.gmra.mrb[60].mxu1 %v930_v19 }
 0x2a4   :  { %1391 = vmatprep.mubr.f32.mxu1 %v935_v41 }
 0x2a7   :  { %1392 = vmatmul.mubr.f32.gmra.mrb[62].mxu1 %v934_v0 }
 0x33e   :  { %v1303_v6 = vpop.f32.mrb[32].mxu1 }
 0x33f   :  { %v2084_v13 = vadd.f32 %v1303_v6, %v2839_v56  ;;  %v1305_v47 = vpop.f32.mrb[33].mxu1 }
 0x340   :  { %v2085_v49 = vadd.f32 %v1305_v47, %v2842_v20 }
 0x341   :  { %v1398_v37 = vmax.f32 %v2084_v13, 0.0 }
 0x342   :  { %v1399_v46 = vmax.f32 %v2085_v49, 0.0  ;;  %v1309_v51 = vpop.f32.mrb[34].mxu1 }
 0x343   :  { %v2086_v52 = vadd.f32 %v1309_v51, %v2839_v56  ;;  %v1311_v10 = vpop.f32.mrb[35].mxu1 }
 0x344   :  { %v2087_v55 = vadd.f32 %v1311_v10, %v2842_v20  ;;  %1526 = vmatprep.mubr.f32.mxu0 %v1399_v46 }
 0x345   :  { %1527 = vmatmul.mubr.f32.vlgmr.msra.gmra.mrb[64].mxu0 %v1398_v37  ;;  %v1400_v1 = vmax.f32 %v2086_v52, 0.0 }
 0x346   :  { %v1401_v59 = vmax.f32 %v2087_v55, 0.0  ;;  %v1315_v58 = vpop.f32.mrb[36].mxu1 }
 0x347   :  { %v2088_v33 = vadd.f32 %v1315_v58, %v2839_v56  ;;  %v1317_v60 = vpop.f32.mrb[37].mxu1 }
 0x348   :  { %v2089_v23 = vadd.f32 %v1317_v60, %v2842_v20  ;;  %1531 = vmatprep.mubr.f32.mxu0 %v1401_v59 }
 0x349   :  { %1532 = vmatmul.mubr.f32.gmra.mrb[66].mxu0 %v1400_v1  ;;  %v1402_v61 = vmax.f32 %v2088_v33, 0.0 }
 0x34a   :  { %v1403_v4 = vmax.f32 %v2089_v23, 0.0  ;;  %v1321_v54 = vpop.f32.mrb[38].mxu1 }
 0x34b   :  { %v2090_v45 = vadd.f32 %v1321_v54, %v2839_v56  ;;  %v1323_v5 = vpop.f32.mrb[39].mxu1 }
 0x34c   :  { %v2091_v16 = vadd.f32 %v1323_v5, %v2842_v20  ;;  %1536 = vmatprep.mubr.f32.mxu0 %v1403_v4 }
 0x34d   :  { %1537 = vmatmul.mubr.f32.gmra.mrb[68].mxu0 %v1402_v61  ;;  %v1404_v2 = vmax.f32 %v2090_v45, 0.0 }
 0x34e   :  { %v1405_v7 = vmax.f32 %v2091_v16, 0.0  ;;  %v1327_v8 = vpop.f32.mrb[40].mxu1 }
 0x34f   :  { %v2092_v44 = vadd.f32 %v1327_v8, %v2839_v56  ;;  %v1329_v14 = vpop.f32.mrb[41].mxu1 }
 0x350   :  { %v2093_v34 = vadd.f32 %v1329_v14, %v2842_v20  ;;  %1541 = vmatprep.mubr.f32.mxu0 %v1405_v7 }
 0x351   :  { %1542 = vmatmul.mubr.f32.gmra.mrb[70].mxu0 %v1404_v2  ;;  %v1406_v22 = vmax.f32 %v2092_v44, 0.0 }
 0x352   :  { %v1407_v3 = vmax.f32 %v2093_v34, 0.0  ;;  %v1333_v9 = vpop.f32.mrb[42].mxu1 }
 0x353   :  { %v2094_v57 = vadd.f32 %v1333_v9, %v2839_v56  ;;  %v1335_v27 = vpop.f32.mrb[43].mxu1 }
 0x354   :  { %v2095_v30 = vadd.f32 %v1335_v27, %v2842_v20  ;;  %1546 = vmatprep.mubr.f32.mxu0 %v1407_v3 }
 0x355   :  { %1547 = vmatmul.mubr.f32.gmra.mrb[72].mxu0 %v1406_v22  ;;  %v1408_v29 = vmax.f32 %v2094_v57, 0.0 }
 0x356   :  { %v1409_v28 = vmax.f32 %v2095_v30, 0.0  ;;  %v1339_v25 = vpop.f32.mrb[44].mxu1 }
 0x357   :  { %v2096_v50 = vadd.f32 %v1339_v25, %v2839_v56  ;;  %v1341_v31 = vpop.f32.mrb[45].mxu1 }
 0x358   :  { %v2097_v42 = vadd.f32 %v1341_v31, %v2842_v20  ;;  %1551 = vmatprep.mubr.f32.mxu0 %v1409_v28 }
 0x359   :  { %1552 = vmatmul.mubr.f32.gmra.mrb[74].mxu0 %v1408_v29  ;;  %v1410_v17 = vmax.f32 %v2096_v50, 0.0 }
 0x35a   :  { %v1411_v35 = vmax.f32 %v2097_v42, 0.0  ;;  %v1345_v11 = vpop.f32.mrb[46].mxu1 }
 0x35b   :  { %v2098_v63 = vadd.f32 %v1345_v11, %v2839_v56  ;;  %v1347_v18 = vpop.f32.mrb[47].mxu1 }
 0x35c   :  { %v2099_v32 = vadd.f32 %v1347_v18, %v2842_v20  ;;  %1556 = vmatprep.mubr.f32.mxu0 %v1411_v35 }
 0x35d   :  { %1557 = vmatmul.mubr.f32.gmra.mrb[76].mxu0 %v1410_v17  ;;  %v1412_v38 = vmax.f32 %v2098_v63, 0.0 }
 0x35e   :  { %v1413_v36 = vmax.f32 %v2099_v32, 0.0  ;;  %v1351_v26 = vpop.f32.mrb[48].mxu1 }
 0x35f   :  { %v2100_v53 = vadd.f32 %v1351_v26, %v2839_v56  ;;  %v1353_v40 = vpop.f32.mrb[49].mxu1 }
 0x360   :  { %v2101_v48 = vadd.f32 %v1353_v40, %v2842_v20  ;;  %1561 = vmatprep.mubr.f32.mxu0 %v1413_v36 }
 0x361   :  { %1562 = vmatmul.mubr.f32.gmra.mrb[78].mxu0 %v1412_v38  ;;  %v1414_v19 = vmax.f32 %v2100_v53, 0.0 }
 0x362   :  { %v1415_v24 = vmax.f32 %v2101_v48, 0.0  ;;  %v1357_v15 = vpop.f32.mrb[50].mxu1 }
 0x363   :  { %v2102_v12 = vadd.f32 %v1357_v15, %v2839_v56  ;;  %v1359_v41 = vpop.f32.mrb[51].mxu1 }
 0x364   :  { %v2103_v0 = vadd.f32 %v1359_v41, %v2842_v20  ;;  %1566 = vmatprep.mubr.f32.mxu0 %v1415_v24 }
 0x365   :  { %1567 = vmatmul.mubr.f32.gmra.mrb[80].mxu0 %v1414_v19  ;;  %v1416_v21 = vmax.f32 %v2102_v12, 0.0 }
 0x366   :  { %v1417_v43 = vmax.f32 %v2103_v0, 0.0  ;;  %v1363_v39 = vpop.f32.mrb[52].mxu1 }
 0x367   :  { %v2104_v6 = vadd.f32 %v1363_v39, %v2839_v56  ;;  %v1365_v13 = vpop.f32.mrb[53].mxu1 }
 0x368   :  { %v2105_v47 = vadd.f32 %v1365_v13, %v2842_v20  ;;  %1571 = vmatprep.mubr.f32.mxu0 %v1417_v43 }
 0x369   :  { %1572 = vmatmul.mubr.f32.gmra.mrb[82].mxu0 %v1416_v21  ;;  %v1418_v51 = vmax.f32 %v2104_v6, 0.0 }
 0x36a   :  { %v1419_v49 = vmax.f32 %v2105_v47, 0.0  ;;  %v1369_v46 = vpop.f32.mrb[54].mxu1 }
 0x36b   :  { %v2106_v37 = vadd.f32 %v1369_v46, %v2839_v56  ;;  %v1371_v52 = vpop.f32.mrb[55].mxu1 }
 0x36c   :  { %v2107_v10 = vadd.f32 %v1371_v52, %v2842_v20  ;;  %1576 = vmatprep.mubr.f32.mxu0 %v1419_v49 }
 0x36d   :  { %1577 = vmatmul.mubr.f32.gmra.mrb[84].mxu0 %v1418_v51  ;;  %v1420_v58 = vmax.f32 %v2106_v37, 0.0 }
 0x36e   :  { %v1421_v55 = vmax.f32 %v2107_v10, 0.0  ;;  %v1375_v59 = vpop.f32.mrb[56].mxu1 }
 0x36f   :  { %v2108_v1 = vadd.f32 %v1375_v59, %v2839_v56  ;;  %v1377_v33 = vpop.f32.mrb[57].mxu1 }
 0x370   :  { %v2109_v60 = vadd.f32 %v1377_v33, %v2842_v20  ;;  %1581 = vmatprep.mubr.f32.mxu0 %v1421_v55 }
 0x371   :  { %1582 = vmatmul.mubr.f32.gmra.mrb[86].mxu0 %v1420_v58  ;;  %v1422_v54 = vmax.f32 %v2108_v1, 0.0 }
 0x372   :  { %v1423_v23 = vmax.f32 %v2109_v60, 0.0  ;;  %v1381_v4 = vpop.f32.mrb[58].mxu1 }
 0x373   :  { %v2110_v61 = vadd.f32 %v1381_v4, %v2839_v56  ;;  %v1383_v45 = vpop.f32.mrb[59].mxu1 }
 0x374   :  { %v2111_v5 = vadd.f32 %v1383_v45, %v2842_v20  ;;  %1586 = vmatprep.mubr.f32.mxu0 %v1423_v23 }
 0x375   :  { %1587 = vmatmul.mubr.f32.gmra.mrb[88].mxu0 %v1422_v54  ;;  %v1424_v8 = vmax.f32 %v2110_v61, 0.0 }
 0x376   :  { %v1425_v16 = vmax.f32 %v2111_v5, 0.0  ;;  %v1387_v7 = vpop.f32.mrb[60].mxu1  ;;  %v1643_v5 = vpop.permute.xlu0 %1642 }
 0x377   :  { %v2112_v2 = vadd.f32 %v1387_v7, %v2839_v56  ;;  %v1389_v44 = vpop.f32.mrb[61].mxu1 }
 0x378   :  { %v2113_v14 = vadd.f32 %v1389_v44, %v2842_v20  ;;  %1591 = vmatprep.mubr.f32.mxu0 %v1425_v16  ;;  %v1648_v16 = vrot.slane %v1643_v5, %v2512_v62 }
 0x379   :  { %1592 = vmatmul.mubr.f32.gmra.mrb[90].mxu0 %v1424_v8  ;;  %v1426_v9 = vmax.f32 %v2112_v2, 0.0 }
 0x37a   :  { %v1427_v34 = vmax.f32 %v2113_v14, 0.0  ;;  %v1393_v3 = vpop.f32.mrb[62].mxu1 }
 0x37b   :  { %v2114_v22 = vadd.f32 %v1393_v3, %v2839_v56  ;;  %v1395_v57 = vpop.f32.mrb[63].mxu1 }
 0x37c   :  { %v2115_v27 = vadd.f32 %v1395_v57, %v2842_v20  ;;  %1596 = vmatprep.mubr.f32.mxu0 %v1427_v34 }
 0x37d   :  { %1597 = vmatmul.mubr.f32.gmra.mrb[92].mxu0 %v1426_v9  ;;  %v1428_v28 = vmax.f32 %v2114_v22, 0.0 }
 0x37e   :  { %v1429_v30 = vmax.f32 %v2115_v27, 0.0 }
 0x380   :  { %1601 = vmatprep.mubr.f32.mxu0 %v1429_v30 }
 0x381   :  { %1602 = vmatmul.mubr.f32.gmra.mrb[94].mxu0 %v1428_v28 }
 0x418   :  { %v1724_v25 = vpop.f32.mrb[64].mxu0 }
 0x419   :  { %v1725_v29 = vpop.f32.mrb[65].mxu0 }
 0x41a   :  { %v1726_v50 = vadd.f32 %v1725_v29, %v1724_v25 }
 0x41c   :  { %v1727_v31 = vpop.f32.mrb[66].mxu0  ;;  %1608 = vxpose.xlu0.b32.start [1/16] (narrow) %v1726_v50, 8 }
 0x41d   :  { %v1728_v42 = vpop.f32.mrb[67].mxu0 }
 0x41e   :  { %v1729_v35 = vadd.f32 %v1728_v42, %v1727_v31 }
 0x420   :  { %v1730_v11 = vpop.f32.mrb[68].mxu0  ;;  %1609 = vxpose.xlu0.b32.cont [2/16] (narrow) %v1729_v35, 8 }
 0x421   :  { %v1731_v17 = vpop.f32.mrb[69].mxu0 }
 0x422   :  { %v1732_v56 = vadd.f32 %v1731_v17, %v1730_v11 }
 0x424   :  { %v1733_v63 = vpop.f32.mrb[70].mxu0  ;;  %1610 = vxpose.xlu0.b32.cont [3/16] (narrow) %v1732_v56, 8 }
 0x425   :  { %v1734_v20 = vpop.f32.mrb[71].mxu0 }
 0x426   :  { %v1735_v18 = vadd.f32 %v1734_v20, %v1733_v63 }
 0x428   :  { %v1736_v32 = vpop.f32.mrb[72].mxu0  ;;  %1611 = vxpose.xlu0.b32.cont [4/16] (narrow) %v1735_v18, 8 }
 0x429   :  { %v1737_v36 = vpop.f32.mrb[73].mxu0 }
 0x42a   :  { %v1738_v26 = vadd.f32 %v1737_v36, %v1736_v32 }
 0x42c   :  { %v1739_v38 = vpop.f32.mrb[74].mxu0  ;;  %1612 = vxpose.xlu0.b32.cont [5/16] (narrow) %v1738_v26, 8 }
 0x42d   :  { %v1740_v53 = vpop.f32.mrb[75].mxu0 }
 0x42e   :  { %v1741_v40 = vadd.f32 %v1740_v53, %v1739_v38 }
 0x430   :  { %v1742_v48 = vpop.f32.mrb[76].mxu0  ;;  %1613 = vxpose.xlu0.b32.cont [6/16] (narrow) %v1741_v40, 8 }
 0x431   :  { %v1743_v24 = vpop.f32.mrb[77].mxu0 }
 0x432   :  { %v1744_v15 = vadd.f32 %v1743_v24, %v1742_v48 }
 0x434   :  { %v1745_v19 = vpop.f32.mrb[78].mxu0  ;;  %1614 = vxpose.xlu0.b32.cont [7/16] (narrow) %v1744_v15, 8 }
 0x435   :  { %v1746_v12 = vpop.f32.mrb[79].mxu0 }
 0x436   :  { %v1747_v41 = vadd.f32 %v1746_v12, %v1745_v19 }
 0x438   :  { %v1748_v0 = vpop.f32.mrb[80].mxu0  ;;  %1615 = vxpose.xlu0.b32.cont [8/16] (narrow) %v1747_v41, 8 }
 0x439   :  { %v1749_v43 = vpop.f32.mrb[81].mxu0 }
 0x43a   :  { %v1750_v39 = vadd.f32 %v1749_v43, %v1748_v0 }
 0x43c   :  { %v1751_v21 = vpop.f32.mrb[82].mxu0  ;;  %1616 = vxpose.xlu0.b32.cont [9/16] (narrow) %v1750_v39, 8 }
 0x43d   :  { %v1752_v6 = vpop.f32.mrb[83].mxu0 }
 0x43e   :  { %v1753_v13 = vadd.f32 %v1752_v6, %v1751_v21 }
 0x440   :  { %v1754_v47 = vpop.f32.mrb[84].mxu0  ;;  %1617 = vxpose.xlu0.b32.cont [10/16] (narrow) %v1753_v13, 8 }
 0x441   :  { %v1755_v49 = vpop.f32.mrb[85].mxu0 }
 0x442   :  { %v1756_v46 = vadd.f32 %v1755_v49, %v1754_v47 }
 0x444   :  { %v1757_v51 = vpop.f32.mrb[86].mxu0  ;;  %1618 = vxpose.xlu0.b32.cont [11/16] (narrow) %v1756_v46, 8 }
 0x445   :  { %v1758_v37 = vpop.f32.mrb[87].mxu0 }
 0x446   :  { %v1759_v52 = vadd.f32 %v1758_v37, %v1757_v51 }
 0x448   :  { %v1760_v10 = vpop.f32.mrb[88].mxu0  ;;  %1619 = vxpose.xlu0.b32.cont [12/16] (narrow) %v1759_v52, 8 }
 0x449   :  { %v1761_v55 = vpop.f32.mrb[89].mxu0 }
 0x44a   :  { %v1762_v59 = vadd.f32 %v1761_v55, %v1760_v10 }
 0x44c   :  { %v1763_v58 = vpop.f32.mrb[90].mxu0  ;;  %1620 = vxpose.xlu0.b32.cont [13/16] (narrow) %v1762_v59, 8 }
 0x44d   :  { %v1764_v1 = vpop.f32.mrb[91].mxu0 }
 0x44e   :  { %v1765_v33 = vadd.f32 %v1764_v1, %v1763_v58 }
 0x450   :  { %v1766_v60 = vpop.f32.mrb[92].mxu0  ;;  %1621 = vxpose.xlu0.b32.cont [14/16] (narrow) %v1765_v33, 8 }
 0x451   :  { %v1767_v23 = vpop.f32.mrb[93].mxu0 }
 0x452   :  { %v1768_v4 = vadd.f32 %v1767_v23, %v1766_v60 }
 0x454   :  { %v1769_v54 = vpop.f32.mrb[94].mxu0  ;;  %1622 = vxpose.xlu0.b32.cont [15/16] (narrow) %v1768_v4, 8 }
 0x455   :  { %v1770_v61 = vpop.f32.mrb[95].mxu0 }
 0x456   :  { %v1771_v45 = vadd.f32 %v1770_v61, %v1769_v54 }
 0x458   :  { %1623 = vxpose.xlu0.b32.end [16/16] (narrow) %v1771_v45, 8 }
 0x49c   :  { %v1624_v7 = vpop.trf.xlu0 }
 0x49d   :  { %v1649_v8 = vadd.f32 %v1648_v16, %v1624_v7 }
 0x49f   :  { %v1650_v2 = vsub.f32 0.0, %v1649_v8 }
 0x4a1   :  { %v1651_v44 = vmul.f32 1.442695, %v1650_v2 }
 0x4a3   :  { %2161 = vpow2.f32 %v1651_v44 }
 0x4ad   :  { %v2162_v14 = vpop.eup %2161 }
 0x4ae   :  { %v1653_v34 = vadd.f32 1.0, %v2162_v14 }
 0x4b0   :  { %2163 = vrcp.f32 %v1653_v34 }
 0x4ba   :  { %v2164_v3 = vpop.eup %2163 }
 0x4bb   :  { %1656 = vst [vmem:[#allocation11] sm:$0x1] %v2164_v3 }
 0x4bc   :  { %2286 = shalt.err (!%p2283_p2)
}
 0x4bd   :  { %s2287_s21 = scalar_lea.hbm %s2898_s9, 16 }
 0x4be   :  { %p2288_p3 = scmp.ne.s32.totalorder %s2898_s9, %s2287_s21  ;;  %p2291_p4 = scmp.lt.u32.totalorder %s2287_s21, %s2898_s9 }
 0x4c0   :  { %p2293_p5 = pnand %p2291_p4, %p2288_p3 }
 0x4c2   :  { %2296 = shalt.err (!%p2293_p5)
}
 0x4c3   :  { %1666 = dma.vmem_to_hbm [thread:$0]  %s1664_s10, 16, %s2898_s9, [#allocation4]  }
 0x4c4   :  { %2303 = dma.done.wait [#allocation4], 16  }
 0x4c5   :  { %2304 = vsyncadd [#allocation4], 4294967280 }
 0x4c6   :  { %1670 = vsyncpa [#allocation3], 1 }
 0x4c7   :  { %1671 = vsyncpa [#allocation6], 1 }
 0x4c8   :  { %1672 = vsyncpa [#allocation9], 1 }
 0x4c9   :  { %1673 = vsyncpa [#allocation4], 1 }

</bundles_post_ra>
